<compile_context>
chip_gen: v7x
topology: tpu7x:2x2x1
jax: 0.10.0
libtpu: 0.0.40
codegen_flags: <defaults>
</compile_context>

<pallas_src>
import functools

import jax
import jax.numpy as jnp
from jax.experimental import pallas as pl
from jax.experimental.pallas import tpu as pltpu


# ---------------------------------------------------------------------------
# Wrapper-side quadrant im2col (cheap static slices, packed into one array).
# Rows are ordered (c, kh, kw) to match PyTorch Conv2d weight flattening,
# columns are the pooled output position (i * ow2 + j).
# ---------------------------------------------------------------------------
def _quadrant_patch_list(x_nchw, k):
    N, C, H, W = x_nchw.shape
    oh, ow = H - k + 1, W - k + 1
    assert oh % 2 == 0 and ow % 2 == 0, (
        "SimpleCNN pooling assumes even conv output sizes (32x32 input).")
    oh2, ow2 = oh // 2, ow // 2
    quads = []
    for dh in range(2):
        for dw in range(2):
            taps = []
            for di in range(k):
                for dj in range(k):
                    h0, w0 = dh + di, dw + dj
                    taps.append(x_nchw[:, :,
                                       h0:h0 + 2 * oh2 - 1:2,
                                       w0:w0 + 2 * ow2 - 1:2])  # (N,C,oh2,ow2)
            q = jnp.stack(taps, axis=2)                         # (N,C,k*k,oh2,ow2)
            quads.append(q.reshape(N, C * k * k, oh2 * ow2))    # (N,K,P)
    return quads, (oh2, ow2)


# ---------------------------------------------------------------------------
# Kernel A: conv1 (transposed im2col matmul) + bias + ReLU + 2x2 maxpool.
#   patches block : (TB, 4, K, P)   (4 = pooling quadrants, single DMA)
#   weight        : (O, K), bias (O, 1)
#   output block  : (TB, O, P)      (NCHW pooled activation, spatial flattened)
# ---------------------------------------------------------------------------
def _conv1_kernel(p_ref, w_ref, b_ref, o_ref, *, tb):
    w = w_ref[...]                                        # (O, K)
    b = b_ref[...]                                        # (O, 1)
    for t in range(tb):
        y = jnp.maximum(
            jnp.maximum(
                jnp.dot(w, p_ref[t, 0], preferred_element_type=jnp.float32),
                jnp.dot(w, p_ref[t, 1], preferred_element_type=jnp.float32)),
            jnp.maximum(
                jnp.dot(w, p_ref[t, 2], preferred_element_type=jnp.float32),
                jnp.dot(w, p_ref[t, 3], preferred_element_type=jnp.float32)))
        # max over quadrants, then +bias, then ReLU == pool(relu(conv + b))
        o_ref[t] = jnp.maximum(y + b, 0.0)


def conv1_stage(x_nchw, w_ockk, b_o, tb):
    N, C, H, W = x_nchw.shape
    O, C2, k, _ = w_ockk.shape
    assert C == C2
    quads, (oh2, ow2) = _quadrant_patch_list(x_nchw.astype(jnp.float32), k)
    patches = jnp.stack(quads, axis=1)                    # (N, 4, K, P)
    K, P = C * k * k, oh2 * ow2
    w2 = w_ockk.reshape(O, K).astype(jnp.float32)
    b2 = b_o.reshape(O, 1).astype(jnp.float32)

    cost = pl.CostEstimate(
        flops=2 * N * 4 * O * K * P,
        transcendentals=0,
        bytes_accessed=4 * (N * 4 * K * P + O * K + O + N * O * P))

    out = pl.pallas_call(
        functools.partial(_conv1_kernel, tb=tb),
        out_shape=jax.ShapeDtypeStruct((N, O, P), jnp.float32),
        grid=(N // tb,),
        in_specs=[
            pl.BlockSpec((tb, 4, K, P), lambda i: (i, 0, 0, 0)),
            pl.BlockSpec((O, K), lambda i: (0, 0)),
            pl.BlockSpec((O, 1), lambda i: (0, 0)),
        ],
        out_specs=pl.BlockSpec((tb, O, P), lambda i: (i, 0, 0)),
        compiler_params=pltpu.CompilerParams(
            dimension_semantics=("parallel",),
            vmem_limit_bytes=64 * 1024 * 1024),
        cost_estimate=cost,
    )(patches, w2, b2)
    return out.reshape(N, O, oh2, ow2)                    # (N, 6, 14, 14)


# ---------------------------------------------------------------------------
# Kernel B: conv2 + bias + ReLU + pool  +  fc1 + relu + fc2 + relu + fc3,
# fully fused.  The pooled conv2 activation stays in a VMEM scratch.
#   patches block : (TB, K2, 4*P2)  (quadrants lane-concatenated, single DMA)
#   fc1 weight    : (O2, P2, F1)    pre-permuted so that
#                   h1 = sum_c act[:, c, :] @ w1r[c]  reproduces the PyTorch
#                   (c, h, w)-order flatten with no in-kernel reshape.
# ---------------------------------------------------------------------------
def _conv2_mlp_kernel(p_ref, cw_ref, cb_ref, w1_ref, b1_ref, w2_ref, b2_ref,
                      w3_ref, b3_ref, o_ref, act_scr, *, tb, p2):
    cw = cw_ref[...]                                      # (O2, K2)
    cb = cb_ref[...]                                      # (O2, 1)
    for t in range(tb):
        z = jnp.dot(cw, p_ref[t], preferred_element_type=jnp.float32)  # (O2, 4*P2)
        m = jnp.maximum(
            jnp.maximum(z[:, 0:p2], z[:, p2:2 * p2]),
            jnp.maximum(z[:, 2 * p2:3 * p2], z[:, 3 * p2:4 * p2]))
        act_scr[t] = jnp.maximum(m + cb, 0.0)             # (O2, P2) pooled act

    act = act_scr[...]                                    # (TB, O2, P2)
    n_ch = act.shape[1]
    h = None
    for c in range(n_ch):                                 # fc1 = sum over conv2 channels
        contrib = jnp.dot(act[:, c, :], w1_ref[c],
                          preferred_element_type=jnp.float32)          # (TB, F1)
        h = contrib if h is None else h + contrib
    h = jnp.maximum(h + b1_ref[...], 0.0)                               # fc1 + relu
    h = jnp.maximum(jnp.dot(h, w2_ref[...],
                            preferred_element_type=jnp.float32) + b2_ref[...], 0.0)
    o_ref[...] = (jnp.dot(h, w3_ref[...],
                          preferred_element_type=jnp.float32) + b3_ref[...])


def conv2_mlp_stage(x_pooled1, params, tb):
    N = x_pooled1.shape[0]
    cw4 = params["conv2_w"]
    O2, C2, k2, _ = cw4.shape
    assert x_pooled1.shape[1] == C2
    quads, (oh2, ow2) = _quadrant_patch_list(x_pooled1.astype(jnp.float32), k2)
    patches = jnp.concatenate(quads, axis=2)              # (N, K2, 4*P2)
    K2, P2 = C2 * k2 * k2, oh2 * ow2
    assert O2 * P2 == params["fc1_w"].shape[1], (
        "flatten size mismatch: SimpleCNN requires 32x32 input (16*5*5=400).")

    cw = cw4.reshape(O2, K2).astype(jnp.float32)
    cb = params["conv2_b"].reshape(O2, 1).astype(jnp.float32)
    F1 = params["fc1_w"].shape[0]
    F2 = params["fc2_w"].shape[0]
    F3 = params["fc3_w"].shape[0]
    # fc1_w[j, c*P2 + p]  ->  w1r[c, p, j]
    w1r = params["fc1_w"].reshape(F1, O2, P2).transpose(1, 2, 0).astype(jnp.float32)
    b1 = params["fc1_b"].reshape(1, F1).astype(jnp.float32)
    wf2 = params["fc2_w"].T.astype(jnp.float32)
    bf2 = params["fc2_b"].reshape(1, F2).astype(jnp.float32)
    wf3 = params["fc3_w"].T.astype(jnp.float32)
    bf3 = params["fc3_b"].reshape(1, F3).astype(jnp.float32)

    cost = pl.CostEstimate(
        flops=2 * N * (O2 * K2 * 4 * P2 + O2 * P2 * F1 + F1 * F2 + F2 * F3),
        transcendentals=0,
        bytes_accessed=4 * (N * K2 * 4 * P2 + O2 * K2 + O2 + O2 * P2 * F1 + F1
                            + F1 * F2 + F2 + F2 * F3 + F3 + N * F3))

    return pl.pallas_call(
        functools.partial(_conv2_mlp_kernel, tb=tb, p2=P2),
        out_shape=jax.ShapeDtypeStruct((N, F3), jnp.float32),
        grid=(N // tb,),
        in_specs=[
            pl.BlockSpec((tb, K2, 4 * P2), lambda i: (i, 0, 0)),
            pl.BlockSpec((O2, K2), lambda i: (0, 0)),
            pl.BlockSpec((O2, 1), lambda i: (0, 0)),
            pl.BlockSpec((O2, P2, F1), lambda i: (0, 0, 0)),
            pl.BlockSpec((1, F1), lambda i: (0, 0)),
            pl.BlockSpec((F1, F2), lambda i: (0, 0)),
            pl.BlockSpec((1, F2), lambda i: (0, 0)),
            pl.BlockSpec((F2, F3), lambda i: (0, 0)),
            pl.BlockSpec((1, F3), lambda i: (0, 0)),
        ],
        out_specs=pl.BlockSpec((tb, F3), lambda i: (i, 0)),
        scratch_shapes=[pltpu.VMEM((tb, O2, P2), jnp.float32)],
        compiler_params=pltpu.CompilerParams(
            dimension_semantics=("parallel",),
            vmem_limit_bytes=64 * 1024 * 1024),
        cost_estimate=cost,
    )(patches, cw, cb, w1r, b1, wf2, bf2, wf3, bf3)
    # TODO(synk): conv1's quadrant im2col is still built by XLA (conv2's output
    # never round-trips anymore); moving it fully in-kernel needs strided /
    # reshape lowering that is not worth the risk at these shapes.


# ---------------------------------------------------------------------------
# Full forward (matches PyTorch SimpleCNN.forward)
# ---------------------------------------------------------------------------
def simple_cnn_forward(x_nchw, params, block_batch=8):
    N, C, H, W = x_nchw.shape
    assert C == 3 and H == 32 and W == 32, (
        "SimpleCNN expects (N, 3, 32, 32) input (16*5*5 flatten).")
    tb = max(1, min(block_batch, N))
    n_pad = ((N + tb - 1) // tb) * tb
    x = x_nchw.astype(jnp.float32)
    if n_pad != N:
        x = jnp.concatenate(
            [x, jnp.zeros((n_pad - N, C, H, W), jnp.float32)], axis=0)
    a1 = conv1_stage(x, params["conv1_w"], params["conv1_b"], tb)   # (Np,6,14,14)
    out = conv2_mlp_stage(a1, params, tb)                           # (Np,10)
    return out[:N]


def _reference_forward(x, params):
    """Pure-JAX reference for a numerical sanity check."""
    def conv(x, w, b):
        y = jax.lax.conv_general_dilated(
            x, w, (1, 1), "VALID", dimension_numbers=("NCHW", "OIHW", "NCHW"))
        return jax.nn.relu(y + b[None, :, None, None])

    def pool(x):
        return jax.lax.reduce_window(x, -jnp.inf, jax.lax.max,
                                     (1, 1, 2, 2), (1, 1, 2, 2), "VALID")

    x = pool(conv(x, params["conv1_w"], params["conv1_b"]))
    x = pool(conv(x, params["conv2_w"], params["conv2_b"]))
    x = x.reshape(x.shape[0], -1)
    x = jax.nn.relu(x @ params["fc1_w"].T + params["fc1_b"])
    x = jax.nn.relu(x @ params["fc2_w"].T + params["fc2_b"])
    return x @ params["fc3_w"].T + params["fc3_b"]


def init_params(key):
    """Deterministic synthetic weights with PyTorch parameter shapes."""
    ks = jax.random.split(key, 10)

    def u(k, shape, fan_in):
        bound = 1.0 / jnp.sqrt(fan_in)
        return jax.random.uniform(k, shape, jnp.float32, -bound, bound)

    return {
        "conv1_w": u(ks[0], (6, 3, 5, 5), 3 * 5 * 5),
        "conv1_b": u(ks[1], (6,), 3 * 5 * 5),
        "conv2_w": u(ks[2], (16, 6, 5, 5), 6 * 5 * 5),
        "conv2_b": u(ks[3], (16,), 6 * 5 * 5),
        "fc1_w": u(ks[4], (120, 400), 400),
        "fc1_b": u(ks[5], (120,), 400),
        "fc2_w": u(ks[6], (84, 120), 120),
        "fc2_b": u(ks[7], (84,), 120),
        "fc3_w": u(ks[8], (10, 84), 84),
        "fc3_b": u(ks[9], (10,), 84),
    }


if __name__ == "__main__":
    key = jax.random.PRNGKey(0)
    k_x, k_p = jax.random.split(key)
    # Spatial size 32 is required by the module's 16*5*5 flatten; batch small.
    x = jax.random.normal(k_x, (2, 3, 32, 32), dtype=jnp.float32)
    params = init_params(k_p)

    out = jax.jit(simple_cnn_forward)(x, params)
    out = jax.block_until_ready(out)
    assert out.shape == (2, 10), out.shape

    ref = jax.block_until_ready(jax.jit(_reference_forward)(x, params))
    assert jnp.allclose(out, ref, atol=1e-4, rtol=1e-4), float(
        jnp.max(jnp.abs(out - ref)))

    print("KERNEL_OK")
</pallas_src>

<mosaic_0001>
module attributes {stable_mosaic.version = 11 : i64} {
  func.func @_conv1_kernel(%arg0: i32, %arg1: memref<2x4x75x196xf32, #tpu.memory_space<vmem>>, %arg2: memref<6x75xf32, #tpu.memory_space<vmem>>, %arg3: memref<6x1xf32, #tpu.memory_space<vmem>>, %arg4: memref<2x6x196xf32, #tpu.memory_space<vmem>>) attributes {dimension_semantics = [#tpu.dimension_semantics<parallel>], iteration_bounds = array<i64: 1>, scalar_prefetch = 0 : i64, scratch_operands = 0 : i64, tpu.core_type = #tpu.core_type<tc>, window_params = [{transform_indices = @transform_0, window_bounds = array<i64: 2, 4, 75, 196>}, {pipeline_mode = #tpu.pipeline_mode<synchronous>, transform_indices = @transform_1, window_bounds = array<i64: 6, 75>}, {pipeline_mode = #tpu.pipeline_mode<synchronous>, transform_indices = @transform_2, window_bounds = array<i64: 6, 1>}, {transform_indices = @transform_3, window_bounds = array<i64: 2, 6, 196>}]} {
    %c0 = arith.constant 0 : index
    %c0_0 = arith.constant 0 : index
    %0 = vector.load %arg2[%c0, %c0_0] : memref<6x75xf32, #tpu.memory_space<vmem>>, vector<6x75xf32>
    %c0_1 = arith.constant 0 : index
    %c0_2 = arith.constant 0 : index
    %1 = vector.load %arg3[%c0_1, %c0_2] : memref<6x1xf32, #tpu.memory_space<vmem>>, vector<6x1xf32>
    %c0_3 = arith.constant 0 : index
    %c0_4 = arith.constant 0 : index
    %c0_5 = arith.constant 0 : index
    %c0_6 = arith.constant 0 : index
    %2 = vector.load %arg1[%c0_3, %c0_4, %c0_5, %c0_6] : memref<2x4x75x196xf32, #tpu.memory_space<vmem>>, vector<1x1x75x196xf32>
    %3 = vector.shape_cast %2 : vector<1x1x75x196xf32> to vector<75x196xf32>
    %cst = arith.constant dense<0.000000e+00> : vector<6x196xf32>
    %4 = tpu.matmul %0, %3, %cst {dimension_numbers = #tpu.dot_dimension_numbers<[1], [0], [0], [1], [0, 0, 1, 1], [], []>} : vector<6x75xf32>, vector<75x196xf32>, vector<6x196xf32> -> vector<6x196xf32>
    %c0_7 = arith.constant 0 : index
    %c1 = arith.constant 1 : index
    %c0_8 = arith.constant 0 : index
    %c0_9 = arith.constant 0 : index
    %5 = vector.load %arg1[%c0_7, %c1, %c0_8, %c0_9] : memref<2x4x75x196xf32, #tpu.memory_space<vmem>>, vector<1x1x75x196xf32>
    %6 = vector.shape_cast %5 : vector<1x1x75x196xf32> to vector<75x196xf32>
    %cst_10 = arith.constant dense<0.000000e+00> : vector<6x196xf32>
    %7 = tpu.matmul %0, %6, %cst_10 {dimension_numbers = #tpu.dot_dimension_numbers<[1], [0], [0], [1], [0, 0, 1, 1], [], []>} : vector<6x75xf32>, vector<75x196xf32>, vector<6x196xf32> -> vector<6x196xf32>
    %8 = arith.maximumf %4, %7 : vector<6x196xf32>
    %c0_11 = arith.constant 0 : index
    %c2 = arith.constant 2 : index
    %c0_12 = arith.constant 0 : index
    %c0_13 = arith.constant 0 : index
    %9 = vector.load %arg1[%c0_11, %c2, %c0_12, %c0_13] : memref<2x4x75x196xf32, #tpu.memory_space<vmem>>, vector<1x1x75x196xf32>
    %10 = vector.shape_cast %9 : vector<1x1x75x196xf32> to vector<75x196xf32>
    %cst_14 = arith.constant dense<0.000000e+00> : vector<6x196xf32>
    %11 = tpu.matmul %0, %10, %cst_14 {dimension_numbers = #tpu.dot_dimension_numbers<[1], [0], [0], [1], [0, 0, 1, 1], [], []>} : vector<6x75xf32>, vector<75x196xf32>, vector<6x196xf32> -> vector<6x196xf32>
    %c0_15 = arith.constant 0 : index
    %c3 = arith.constant 3 : index
    %c0_16 = arith.constant 0 : index
    %c0_17 = arith.constant 0 : index
    %12 = vector.load %arg1[%c0_15, %c3, %c0_16, %c0_17] : memref<2x4x75x196xf32, #tpu.memory_space<vmem>>, vector<1x1x75x196xf32>
    %13 = vector.shape_cast %12 : vector<1x1x75x196xf32> to vector<75x196xf32>
    %cst_18 = arith.constant dense<0.000000e+00> : vector<6x196xf32>
    %14 = tpu.matmul %0, %13, %cst_18 {dimension_numbers = #tpu.dot_dimension_numbers<[1], [0], [0], [1], [0, 0, 1, 1], [], []>} : vector<6x75xf32>, vector<75x196xf32>, vector<6x196xf32> -> vector<6x196xf32>
    %15 = arith.maximumf %11, %14 : vector<6x196xf32>
    %16 = arith.maximumf %8, %15 : vector<6x196xf32>
    %17 = vector.broadcast %1 : vector<6x1xf32> to vector<6x196xf32>
    %18 = arith.addf %16, %17 : vector<6x196xf32>
    %cst_19 = arith.constant 0.000000e+00 : f32
    %19 = vector.broadcast %cst_19 : f32 to vector<6x196xf32>
    %20 = arith.maximumf %18, %19 : vector<6x196xf32>
    %c0_20 = arith.constant 0 : index
    %c0_21 = arith.constant 0 : index
    %c0_22 = arith.constant 0 : index
    %21 = vector.load %arg4[%c0_20, %c0_21, %c0_22] : memref<2x6x196xf32, #tpu.memory_space<vmem>>, vector<1x6x196xf32>
    %22 = vector.shape_cast %21 : vector<1x6x196xf32> to vector<6x196xf32>
    %23 = vector.shape_cast %20 : vector<6x196xf32> to vector<1x6x196xf32>
    tpu.vector_store %arg4[%c0_20, %c0_21, %c0_22], %23 {strides = array<i32>} : memref<2x6x196xf32, #tpu.memory_space<vmem>>, vector<1x6x196xf32>,
    %c1_23 = arith.constant 1 : index
    %c0_24 = arith.constant 0 : index
    %c0_25 = arith.constant 0 : index
    %c0_26 = arith.constant 0 : index
    %24 = vector.load %arg1[%c1_23, %c0_24, %c0_25, %c0_26] : memref<2x4x75x196xf32, #tpu.memory_space<vmem>>, vector<1x1x75x196xf32>
    %25 = vector.shape_cast %24 : vector<1x1x75x196xf32> to vector<75x196xf32>
    %cst_27 = arith.constant dense<0.000000e+00> : vector<6x196xf32>
    %26 = tpu.matmul %0, %25, %cst_27 {dimension_numbers = #tpu.dot_dimension_numbers<[1], [0], [0], [1], [0, 0, 1, 1], [], []>} : vector<6x75xf32>, vector<75x196xf32>, vector<6x196xf32> -> vector<6x196xf32>
    %c1_28 = arith.constant 1 : index
    %c1_29 = arith.constant 1 : index
    %c0_30 = arith.constant 0 : index
    %c0_31 = arith.constant 0 : index
    %27 = vector.load %arg1[%c1_28, %c1_29, %c0_30, %c0_31] : memref<2x4x75x196xf32, #tpu.memory_space<vmem>>, vector<1x1x75x196xf32>
    %28 = vector.shape_cast %27 : vector<1x1x75x196xf32> to vector<75x196xf32>
    %cst_32 = arith.constant dense<0.000000e+00> : vector<6x196xf32>
    %29 = tpu.matmul %0, %28, %cst_32 {dimension_numbers = #tpu.dot_dimension_numbers<[1], [0], [0], [1], [0, 0, 1, 1], [], []>} : vector<6x75xf32>, vector<75x196xf32>, vector<6x196xf32> -> vector<6x196xf32>
    %30 = arith.maximumf %26, %29 : vector<6x196xf32>
    %c1_33 = arith.constant 1 : index
    %c2_34 = arith.constant 2 : index
    %c0_35 = arith.constant 0 : index
    %c0_36 = arith.constant 0 : index
    %31 = vector.load %arg1[%c1_33, %c2_34, %c0_35, %c0_36] : memref<2x4x75x196xf32, #tpu.memory_space<vmem>>, vector<1x1x75x196xf32>
    %32 = vector.shape_cast %31 : vector<1x1x75x196xf32> to vector<75x196xf32>
    %cst_37 = arith.constant dense<0.000000e+00> : vector<6x196xf32>
    %33 = tpu.matmul %0, %32, %cst_37 {dimension_numbers = #tpu.dot_dimension_numbers<[1], [0], [0], [1], [0, 0, 1, 1], [], []>} : vector<6x75xf32>, vector<75x196xf32>, vector<6x196xf32> -> vector<6x196xf32>
    %c1_38 = arith.constant 1 : index
    %c3_39 = arith.constant 3 : index
    %c0_40 = arith.constant 0 : index
    %c0_41 = arith.constant 0 : index
    %34 = vector.load %arg1[%c1_38, %c3_39, %c0_40, %c0_41] : memref<2x4x75x196xf32, #tpu.memory_space<vmem>>, vector<1x1x75x196xf32>
    %35 = vector.shape_cast %34 : vector<1x1x75x196xf32> to vector<75x196xf32>
    %cst_42 = arith.constant dense<0.000000e+00> : vector<6x196xf32>
    %36 = tpu.matmul %0, %35, %cst_42 {dimension_numbers = #tpu.dot_dimension_numbers<[1], [0], [0], [1], [0, 0, 1, 1], [], []>} : vector<6x75xf32>, vector<75x196xf32>, vector<6x196xf32> -> vector<6x196xf32>
    %37 = arith.maximumf %33, %36 : vector<6x196xf32>
    %38 = arith.maximumf %30, %37 : vector<6x196xf32>
    %39 = vector.broadcast %1 : vector<6x1xf32> to vector<6x196xf32>
    %40 = arith.addf %38, %39 : vector<6x196xf32>
    %cst_43 = arith.constant 0.000000e+00 : f32
    %41 = vector.broadcast %cst_43 : f32 to vector<6x196xf32>
    %42 = arith.maximumf %40, %41 : vector<6x196xf32>
    %c1_44 = arith.constant 1 : index
    %c0_45 = arith.constant 0 : index
    %c0_46 = arith.constant 0 : index
    %43 = vector.load %arg4[%c1_44, %c0_45, %c0_46] : memref<2x6x196xf32, #tpu.memory_space<vmem>>, vector<1x6x196xf32>
    %44 = vector.shape_cast %43 : vector<1x6x196xf32> to vector<6x196xf32>
    %45 = vector.shape_cast %42 : vector<6x196xf32> to vector<1x6x196xf32>
    tpu.vector_store %arg4[%c1_44, %c0_45, %c0_46], %45 {strides = array<i32>} : memref<2x6x196xf32, #tpu.memory_space<vmem>>, vector<1x6x196xf32>,
    return
  }
  func.func @transform_0(%arg0: i32) -> (i32, i32, i32, i32) {
    %c0_i32 = arith.constant 0 : i32
    %c0_i32_0 = arith.constant 0 : i32
    %c0_i32_1 = arith.constant 0 : i32
    %c0_i32_2 = arith.constant 0 : i32
    return %arg0, %c0_i32, %c0_i32_0, %c0_i32_1 : i32, i32, i32, i32
  }
  func.func @transform_1(%arg0: i32) -> (i32, i32) {
    %c0_i32 = arith.constant 0 : i32
    %c0_i32_0 = arith.constant 0 : i32
    %c0_i32_1 = arith.constant 0 : i32
    return %c0_i32, %c0_i32_0 : i32, i32
  }
  func.func @transform_2(%arg0: i32) -> (i32, i32) {
    %c0_i32 = arith.constant 0 : i32
    %c0_i32_0 = arith.constant 0 : i32
    %c0_i32_1 = arith.constant 0 : i32
    return %c0_i32, %c0_i32_0 : i32, i32
  }
  func.func @transform_3(%arg0: i32) -> (i32, i32, i32) {
    %c0_i32 = arith.constant 0 : i32
    %c0_i32_0 = arith.constant 0 : i32
    %c0_i32_1 = arith.constant 0 : i32
    return %arg0, %c0_i32, %c0_i32_0 : i32, i32, i32
  }
}

module attributes {stable_mosaic.version = 11 : i64} {
  func.func @_conv2_mlp_kernel(%arg0: i32, %arg1: memref<2x150x100xf32, #tpu.memory_space<vmem>>, %arg2: memref<16x150xf32, #tpu.memory_space<vmem>>, %arg3: memref<16x1xf32, #tpu.memory_space<vmem>>, %arg4: memref<16x25x120xf32, #tpu.memory_space<vmem>>, %arg5: memref<1x120xf32, #tpu.memory_space<vmem>>, %arg6: memref<120x84xf32, #tpu.memory_space<vmem>>, %arg7: memref<1x84xf32, #tpu.memory_space<vmem>>, %arg8: memref<84x10xf32, #tpu.memory_space<vmem>>, %arg9: memref<1x10xf32, #tpu.memory_space<vmem>>, %arg10: memref<2x10xf32, #tpu.memory_space<vmem>>, %arg11: memref<2x16x25xf32, #tpu.memory_space<vmem>>) attributes {dimension_semantics = [#tpu.dimension_semantics<parallel>], iteration_bounds = array<i64: 1>, scalar_prefetch = 0 : i64, scratch_operands = 1 : i64, tpu.core_type = #tpu.core_type<tc>, window_params = [{transform_indices = @transform_0, window_bounds = array<i64: 2, 150, 100>}, {pipeline_mode = #tpu.pipeline_mode<synchronous>, transform_indices = @transform_1, window_bounds = array<i64: 16, 150>}, {pipeline_mode = #tpu.pipeline_mode<synchronous>, transform_indices = @transform_2, window_bounds = array<i64: 16, 1>}, {pipeline_mode = #tpu.pipeline_mode<synchronous>, transform_indices = @transform_3, window_bounds = array<i64: 16, 25, 120>}, {pipeline_mode = #tpu.pipeline_mode<synchronous>, transform_indices = @transform_4, window_bounds = array<i64: 1, 120>}, {pipeline_mode = #tpu.pipeline_mode<synchronous>, transform_indices = @transform_5, window_bounds = array<i64: 120, 84>}, {pipeline_mode = #tpu.pipeline_mode<synchronous>, transform_indices = @transform_6, window_bounds = array<i64: 1, 84>}, {pipeline_mode = #tpu.pipeline_mode<synchronous>, transform_indices = @transform_7, window_bounds = array<i64: 84, 10>}, {pipeline_mode = #tpu.pipeline_mode<synchronous>, transform_indices = @transform_8, window_bounds = array<i64: 1, 10>}, {transform_indices = @transform_9, window_bounds = array<i64: 2, 10>}]} {
    %c0 = arith.constant 0 : index
    %c0_0 = arith.constant 0 : index
    %0 = vector.load %arg2[%c0, %c0_0] : memref<16x150xf32, #tpu.memory_space<vmem>>, vector<16x150xf32>
    %c0_1 = arith.constant 0 : index
    %c0_2 = arith.constant 0 : index
    %1 = vector.load %arg3[%c0_1, %c0_2] : memref<16x1xf32, #tpu.memory_space<vmem>>, vector<16x1xf32>
    %c0_3 = arith.constant 0 : index
    %c0_4 = arith.constant 0 : index
    %c0_5 = arith.constant 0 : index
    %2 = vector.load %arg1[%c0_3, %c0_4, %c0_5] : memref<2x150x100xf32, #tpu.memory_space<vmem>>, vector<1x150x100xf32>
    %3 = vector.shape_cast %2 : vector<1x150x100xf32> to vector<150x100xf32>
    %cst = arith.constant dense<0.000000e+00> : vector<16x100xf32>
    %4 = tpu.matmul %0, %3, %cst {dimension_numbers = #tpu.dot_dimension_numbers<[1], [0], [0], [1], [0, 0, 1, 1], [], []>} : vector<16x150xf32>, vector<150x100xf32>, vector<16x100xf32> -> vector<16x100xf32>
    %5 = vector.extract_strided_slice %4 {offsets = [0, 0], sizes = [16, 25], strides = [1, 1]} : vector<16x100xf32> to vector<16x25xf32>
    %6 = vector.extract_strided_slice %4 {offsets = [0, 25], sizes = [16, 25], strides = [1, 1]} : vector<16x100xf32> to vector<16x25xf32>
    %7 = arith.maximumf %5, %6 : vector<16x25xf32>
    %8 = vector.extract_strided_slice %4 {offsets = [0, 50], sizes = [16, 25], strides = [1, 1]} : vector<16x100xf32> to vector<16x25xf32>
    %9 = vector.extract_strided_slice %4 {offsets = [0, 75], sizes = [16, 25], strides = [1, 1]} : vector<16x100xf32> to vector<16x25xf32>
    %10 = arith.maximumf %8, %9 : vector<16x25xf32>
    %11 = arith.maximumf %7, %10 : vector<16x25xf32>
    %12 = vector.broadcast %1 : vector<16x1xf32> to vector<16x25xf32>
    %13 = arith.addf %11, %12 : vector<16x25xf32>
    %cst_6 = arith.constant 0.000000e+00 : f32
    %14 = vector.broadcast %cst_6 : f32 to vector<16x25xf32>
    %15 = arith.maximumf %13, %14 : vector<16x25xf32>
    %c0_7 = arith.constant 0 : index
    %c0_8 = arith.constant 0 : index
    %c0_9 = arith.constant 0 : index
    %16 = vector.load %arg11[%c0_7, %c0_8, %c0_9] : memref<2x16x25xf32, #tpu.memory_space<vmem>>, vector<1x16x25xf32>
    %17 = vector.shape_cast %16 : vector<1x16x25xf32> to vector<16x25xf32>
    %18 = vector.shape_cast %15 : vector<16x25xf32> to vector<1x16x25xf32>
    tpu.vector_store %arg11[%c0_7, %c0_8, %c0_9], %18 {strides = array<i32>} : memref<2x16x25xf32, #tpu.memory_space<vmem>>, vector<1x16x25xf32>,
    %c1 = arith.constant 1 : index
    %c0_10 = arith.constant 0 : index
    %c0_11 = arith.constant 0 : index
    %19 = vector.load %arg1[%c1, %c0_10, %c0_11] : memref<2x150x100xf32, #tpu.memory_space<vmem>>, vector<1x150x100xf32>
    %20 = vector.shape_cast %19 : vector<1x150x100xf32> to vector<150x100xf32>
    %cst_12 = arith.constant dense<0.000000e+00> : vector<16x100xf32>
    %21 = tpu.matmul %0, %20, %cst_12 {dimension_numbers = #tpu.dot_dimension_numbers<[1], [0], [0], [1], [0, 0, 1, 1], [], []>} : vector<16x150xf32>, vector<150x100xf32>, vector<16x100xf32> -> vector<16x100xf32>
    %22 = vector.extract_strided_slice %21 {offsets = [0, 0], sizes = [16, 25], strides = [1, 1]} : vector<16x100xf32> to vector<16x25xf32>
    %23 = vector.extract_strided_slice %21 {offsets = [0, 25], sizes = [16, 25], strides = [1, 1]} : vector<16x100xf32> to vector<16x25xf32>
    %24 = arith.maximumf %22, %23 : vector<16x25xf32>
    %25 = vector.extract_strided_slice %21 {offsets = [0, 50], sizes = [16, 25], strides = [1, 1]} : vector<16x100xf32> to vector<16x25xf32>
    %26 = vector.extract_strided_slice %21 {offsets = [0, 75], sizes = [16, 25], strides = [1, 1]} : vector<16x100xf32> to vector<16x25xf32>
    %27 = arith.maximumf %25, %26 : vector<16x25xf32>
    %28 = arith.maximumf %24, %27 : vector<16x25xf32>
    %29 = vector.broadcast %1 : vector<16x1xf32> to vector<16x25xf32>
    %30 = arith.addf %28, %29 : vector<16x25xf32>
    %cst_13 = arith.constant 0.000000e+00 : f32
    %31 = vector.broadcast %cst_13 : f32 to vector<16x25xf32>
    %32 = arith.maximumf %30, %31 : vector<16x25xf32>
    %c1_14 = arith.constant 1 : index
    %c0_15 = arith.constant 0 : index
    %c0_16 = arith.constant 0 : index
    %33 = vector.load %arg11[%c1_14, %c0_15, %c0_16] : memref<2x16x25xf32, #tpu.memory_space<vmem>>, vector<1x16x25xf32>
    %34 = vector.shape_cast %33 : vector<1x16x25xf32> to vector<16x25xf32>
    %35 = vector.shape_cast %32 : vector<16x25xf32> to vector<1x16x25xf32>
    tpu.vector_store %arg11[%c1_14, %c0_15, %c0_16], %35 {strides = array<i32>} : memref<2x16x25xf32, #tpu.memory_space<vmem>>, vector<1x16x25xf32>,
    %c0_17 = arith.constant 0 : index
    %c0_18 = arith.constant 0 : index
    %c0_19 = arith.constant 0 : index
    %36 = vector.load %arg11[%c0_17, %c0_18, %c0_19] : memref<2x16x25xf32, #tpu.memory_space<vmem>>, vector<2x16x25xf32>
    %37 = vector.extract_strided_slice %36 {offsets = [0, 0, 0], sizes = [2, 1, 25], strides = [1, 1, 1]} : vector<2x16x25xf32> to vector<2x1x25xf32>
    %38 = vector.shape_cast %37 : vector<2x1x25xf32> to vector<2x25xf32>
    %c0_20 = arith.constant 0 : index
    %c0_21 = arith.constant 0 : index
    %c0_22 = arith.constant 0 : index
    %39 = vector.load %arg4[%c0_20, %c0_21, %c0_22] : memref<16x25x120xf32, #tpu.memory_space<vmem>>, vector<1x25x120xf32>
    %40 = vector.shape_cast %39 : vector<1x25x120xf32> to vector<25x120xf32>
    %cst_23 = arith.constant dense<0.000000e+00> : vector<2x120xf32>
    %41 = tpu.matmul %38, %40, %cst_23 {dimension_numbers = #tpu.dot_dimension_numbers<[1], [0], [0], [1], [0, 0, 1, 1], [], []>} : vector<2x25xf32>, vector<25x120xf32>, vector<2x120xf32> -> vector<2x120xf32>
    %42 = vector.extract_strided_slice %36 {offsets = [0, 1, 0], sizes = [2, 1, 25], strides = [1, 1, 1]} : vector<2x16x25xf32> to vector<2x1x25xf32>
    %43 = vector.shape_cast %42 : vector<2x1x25xf32> to vector<2x25xf32>
    %c1_24 = arith.constant 1 : index
    %c0_25 = arith.constant 0 : index
    %c0_26 = arith.constant 0 : index
    %44 = vector.load %arg4[%c1_24, %c0_25, %c0_26] : memref<16x25x120xf32, #tpu.memory_space<vmem>>, vector<1x25x120xf32>
    %45 = vector.shape_cast %44 : vector<1x25x120xf32> to vector<25x120xf32>
    %cst_27 = arith.constant dense<0.000000e+00> : vector<2x120xf32>
    %46 = tpu.matmul %43, %45, %cst_27 {dimension_numbers = #tpu.dot_dimension_numbers<[1], [0], [0], [1], [0, 0, 1, 1], [], []>} : vector<2x25xf32>, vector<25x120xf32>, vector<2x120xf32> -> vector<2x120xf32>
    %47 = arith.addf %41, %46 : vector<2x120xf32>
    %48 = vector.extract_strided_slice %36 {offsets = [0, 2, 0], sizes = [2, 1, 25], strides = [1, 1, 1]} : vector<2x16x25xf32> to vector<2x1x25xf32>
    %49 = vector.shape_cast %48 : vector<2x1x25xf32> to vector<2x25xf32>
    %c2 = arith.constant 2 : index
    %c0_28 = arith.constant 0 : index
    %c0_29 = arith.constant 0 : index
    %50 = vector.load %arg4[%c2, %c0_28, %c0_29] : memref<16x25x120xf32, #tpu.memory_space<vmem>>, vector<1x25x120xf32>
    %51 = vector.shape_cast %50 : vector<1x25x120xf32> to vector<25x120xf32>
    %cst_30 = arith.constant dense<0.000000e+00> : vector<2x120xf32>
    %52 = tpu.matmul %49, %51, %cst_30 {dimension_numbers = #tpu.dot_dimension_numbers<[1], [0], [0], [1], [0, 0, 1, 1], [], []>} : vector<2x25xf32>, vector<25x120xf32>, vector<2x120xf32> -> vector<2x120xf32>
    %53 = arith.addf %47, %52 : vector<2x120xf32>
    %54 = vector.extract_strided_slice %36 {offsets = [0, 3, 0], sizes = [2, 1, 25], strides = [1, 1, 1]} : vector<2x16x25xf32> to vector<2x1x25xf32>
    %55 = vector.shape_cast %54 : vector<2x1x25xf32> to vector<2x25xf32>
    %c3 = arith.constant 3 : index
    %c0_31 = arith.constant 0 : index
    %c0_32 = arith.constant 0 : index
    %56 = vector.load %arg4[%c3, %c0_31, %c0_32] : memref<16x25x120xf32, #tpu.memory_space<vmem>>, vector<1x25x120xf32>
    %57 = vector.shape_cast %56 : vector<1x25x120xf32> to vector<25x120xf32>
    %cst_33 = arith.constant dense<0.000000e+00> : vector<2x120xf32>
    %58 = tpu.matmul %55, %57, %cst_33 {dimension_numbers = #tpu.dot_dimension_numbers<[1], [0], [0], [1], [0, 0, 1, 1], [], []>} : vector<2x25xf32>, vector<25x120xf32>, vector<2x120xf32> -> vector<2x120xf32>
    %59 = arith.addf %53, %58 : vector<2x120xf32>
    %60 = vector.extract_strided_slice %36 {offsets = [0, 4, 0], sizes = [2, 1, 25], strides = [1, 1, 1]} : vector<2x16x25xf32> to vector<2x1x25xf32>
    %61 = vector.shape_cast %60 : vector<2x1x25xf32> to vector<2x25xf32>
    %c4 = arith.constant 4 : index
    %c0_34 = arith.constant 0 : index
    %c0_35 = arith.constant 0 : index
    %62 = vector.load %arg4[%c4, %c0_34, %c0_35] : memref<16x25x120xf32, #tpu.memory_space<vmem>>, vector<1x25x120xf32>
    %63 = vector.shape_cast %62 : vector<1x25x120xf32> to vector<25x120xf32>
    %cst_36 = arith.constant dense<0.000000e+00> : vector<2x120xf32>
    %64 = tpu.matmul %61, %63, %cst_36 {dimension_numbers = #tpu.dot_dimension_numbers<[1], [0], [0], [1], [0, 0, 1, 1], [], []>} : vector<2x25xf32>, vector<25x120xf32>, vector<2x120xf32> -> vector<2x120xf32>
    %65 = arith.addf %59, %64 : vector<2x120xf32>
    %66 = vector.extract_strided_slice %36 {offsets = [0, 5, 0], sizes = [2, 1, 25], strides = [1, 1, 1]} : vector<2x16x25xf32> to vector<2x1x25xf32>
    %67 = vector.shape_cast %66 : vector<2x1x25xf32> to vector<2x25xf32>
    %c5 = arith.constant 5 : index
    %c0_37 = arith.constant 0 : index
    %c0_38 = arith.constant 0 : index
    %68 = vector.load %arg4[%c5, %c0_37, %c0_38] : memref<16x25x120xf32, #tpu.memory_space<vmem>>, vector<1x25x120xf32>
    %69 = vector.shape_cast %68 : vector<1x25x120xf32> to vector<25x120xf32>
    %cst_39 = arith.constant dense<0.000000e+00> : vector<2x120xf32>
    %70 = tpu.matmul %67, %69, %cst_39 {dimension_numbers = #tpu.dot_dimension_numbers<[1], [0], [0], [1], [0, 0, 1, 1], [], []>} : vector<2x25xf32>, vector<25x120xf32>, vector<2x120xf32> -> vector<2x120xf32>
    %71 = arith.addf %65, %70 : vector<2x120xf32>
    %72 = vector.extract_strided_slice %36 {offsets = [0, 6, 0], sizes = [2, 1, 25], strides = [1, 1, 1]} : vector<2x16x25xf32> to vector<2x1x25xf32>
    %73 = vector.shape_cast %72 : vector<2x1x25xf32> to vector<2x25xf32>
    %c6 = arith.constant 6 : index
    %c0_40 = arith.constant 0 : index
    %c0_41 = arith.constant 0 : index
    %74 = vector.load %arg4[%c6, %c0_40, %c0_41] : memref<16x25x120xf32, #tpu.memory_space<vmem>>, vector<1x25x120xf32>
    %75 = vector.shape_cast %74 : vector<1x25x120xf32> to vector<25x120xf32>
    %cst_42 = arith.constant dense<0.000000e+00> : vector<2x120xf32>
    %76 = tpu.matmul %73, %75, %cst_42 {dimension_numbers = #tpu.dot_dimension_numbers<[1], [0], [0], [1], [0, 0, 1, 1], [], []>} : vector<2x25xf32>, vector<25x120xf32>, vector<2x120xf32> -> vector<2x120xf32>
    %77 = arith.addf %71, %76 : vector<2x120xf32>
    %78 = vector.extract_strided_slice %36 {offsets = [0, 7, 0], sizes = [2, 1, 25], strides = [1, 1, 1]} : vector<2x16x25xf32> to vector<2x1x25xf32>
    %79 = vector.shape_cast %78 : vector<2x1x25xf32> to vector<2x25xf32>
    %c7 = arith.constant 7 : index
    %c0_43 = arith.constant 0 : index
    %c0_44 = arith.constant 0 : index
    %80 = vector.load %arg4[%c7, %c0_43, %c0_44] : memref<16x25x120xf32, #tpu.memory_space<vmem>>, vector<1x25x120xf32>
    %81 = vector.shape_cast %80 : vector<1x25x120xf32> to vector<25x120xf32>
    %cst_45 = arith.constant dense<0.000000e+00> : vector<2x120xf32>
    %82 = tpu.matmul %79, %81, %cst_45 {dimension_numbers = #tpu.dot_dimension_numbers<[1], [0], [0], [1], [0, 0, 1, 1], [], []>} : vector<2x25xf32>, vector<25x120xf32>, vector<2x120xf32> -> vector<2x120xf32>
    %83 = arith.addf %77, %82 : vector<2x120xf32>
    %84 = vector.extract_strided_slice %36 {offsets = [0, 8, 0], sizes = [2, 1, 25], strides = [1, 1, 1]} : vector<2x16x25xf32> to vector<2x1x25xf32>
    %85 = vector.shape_cast %84 : vector<2x1x25xf32> to vector<2x25xf32>
    %c8 = arith.constant 8 : index
    %c0_46 = arith.constant 0 : index
    %c0_47 = arith.constant 0 : index
    %86 = vector.load %arg4[%c8, %c0_46, %c0_47] : memref<16x25x120xf32, #tpu.memory_space<vmem>>, vector<1x25x120xf32>
    %87 = vector.shape_cast %86 : vector<1x25x120xf32> to vector<25x120xf32>
    %cst_48 = arith.constant dense<0.000000e+00> : vector<2x120xf32>
    %88 = tpu.matmul %85, %87, %cst_48 {dimension_numbers = #tpu.dot_dimension_numbers<[1], [0], [0], [1], [0, 0, 1, 1], [], []>} : vector<2x25xf32>, vector<25x120xf32>, vector<2x120xf32> -> vector<2x120xf32>
    %89 = arith.addf %83, %88 : vector<2x120xf32>
    %90 = vector.extract_strided_slice %36 {offsets = [0, 9, 0], sizes = [2, 1, 25], strides = [1, 1, 1]} : vector<2x16x25xf32> to vector<2x1x25xf32>
    %91 = vector.shape_cast %90 : vector<2x1x25xf32> to vector<2x25xf32>
    %c9 = arith.constant 9 : index
    %c0_49 = arith.constant 0 : index
    %c0_50 = arith.constant 0 : index
    %92 = vector.load %arg4[%c9, %c0_49, %c0_50] : memref<16x25x120xf32, #tpu.memory_space<vmem>>, vector<1x25x120xf32>
    %93 = vector.shape_cast %92 : vector<1x25x120xf32> to vector<25x120xf32>
    %cst_51 = arith.constant dense<0.000000e+00> : vector<2x120xf32>
    %94 = tpu.matmul %91, %93, %cst_51 {dimension_numbers = #tpu.dot_dimension_numbers<[1], [0], [0], [1], [0, 0, 1, 1], [], []>} : vector<2x25xf32>, vector<25x120xf32>, vector<2x120xf32> -> vector<2x120xf32>
    %95 = arith.addf %89, %94 : vector<2x120xf32>
    %96 = vector.extract_strided_slice %36 {offsets = [0, 10, 0], sizes = [2, 1, 25], strides = [1, 1, 1]} : vector<2x16x25xf32> to vector<2x1x25xf32>
    %97 = vector.shape_cast %96 : vector<2x1x25xf32> to vector<2x25xf32>
    %c10 = arith.constant 10 : index
    %c0_52 = arith.constant 0 : index
    %c0_53 = arith.constant 0 : index
    %98 = vector.load %arg4[%c10, %c0_52, %c0_53] : memref<16x25x120xf32, #tpu.memory_space<vmem>>, vector<1x25x120xf32>
    %99 = vector.shape_cast %98 : vector<1x25x120xf32> to vector<25x120xf32>
    %cst_54 = arith.constant dense<0.000000e+00> : vector<2x120xf32>
    %100 = tpu.matmul %97, %99, %cst_54 {dimension_numbers = #tpu.dot_dimension_numbers<[1], [0], [0], [1], [0, 0, 1, 1], [], []>} : vector<2x25xf32>, vector<25x120xf32>, vector<2x120xf32> -> vector<2x120xf32>
    %101 = arith.addf %95, %100 : vector<2x120xf32>
    %102 = vector.extract_strided_slice %36 {offsets = [0, 11, 0], sizes = [2, 1, 25], strides = [1, 1, 1]} : vector<2x16x25xf32> to vector<2x1x25xf32>
    %103 = vector.shape_cast %102 : vector<2x1x25xf32> to vector<2x25xf32>
    %c11 = arith.constant 11 : index
    %c0_55 = arith.constant 0 : index
    %c0_56 = arith.constant 0 : index
    %104 = vector.load %arg4[%c11, %c0_55, %c0_56] : memref<16x25x120xf32, #tpu.memory_space<vmem>>, vector<1x25x120xf32>
    %105 = vector.shape_cast %104 : vector<1x25x120xf32> to vector<25x120xf32>
    %cst_57 = arith.constant dense<0.000000e+00> : vector<2x120xf32>
    %106 = tpu.matmul %103, %105, %cst_57 {dimension_numbers = #tpu.dot_dimension_numbers<[1], [0], [0], [1], [0, 0, 1, 1], [], []>} : vector<2x25xf32>, vector<25x120xf32>, vector<2x120xf32> -> vector<2x120xf32>
    %107 = arith.addf %101, %106 : vector<2x120xf32>
    %108 = vector.extract_strided_slice %36 {offsets = [0, 12, 0], sizes = [2, 1, 25], strides = [1, 1, 1]} : vector<2x16x25xf32> to vector<2x1x25xf32>
    %109 = vector.shape_cast %108 : vector<2x1x25xf32> to vector<2x25xf32>
    %c12 = arith.constant 12 : index
    %c0_58 = arith.constant 0 : index
    %c0_59 = arith.constant 0 : index
    %110 = vector.load %arg4[%c12, %c0_58, %c0_59] : memref<16x25x120xf32, #tpu.memory_space<vmem>>, vector<1x25x120xf32>
    %111 = vector.shape_cast %110 : vector<1x25x120xf32> to vector<25x120xf32>
    %cst_60 = arith.constant dense<0.000000e+00> : vector<2x120xf32>
    %112 = tpu.matmul %109, %111, %cst_60 {dimension_numbers = #tpu.dot_dimension_numbers<[1], [0], [0], [1], [0, 0, 1, 1], [], []>} : vector<2x25xf32>, vector<25x120xf32>, vector<2x120xf32> -> vector<2x120xf32>
    %113 = arith.addf %107, %112 : vector<2x120xf32>
    %114 = vector.extract_strided_slice %36 {offsets = [0, 13, 0], sizes = [2, 1, 25], strides = [1, 1, 1]} : vector<2x16x25xf32> to vector<2x1x25xf32>
    %115 = vector.shape_cast %114 : vector<2x1x25xf32> to vector<2x25xf32>
    %c13 = arith.constant 13 : index
    %c0_61 = arith.constant 0 : index
    %c0_62 = arith.constant 0 : index
    %116 = vector.load %arg4[%c13, %c0_61, %c0_62] : memref<16x25x120xf32, #tpu.memory_space<vmem>>, vector<1x25x120xf32>
    %117 = vector.shape_cast %116 : vector<1x25x120xf32> to vector<25x120xf32>
    %cst_63 = arith.constant dense<0.000000e+00> : vector<2x120xf32>
    %118 = tpu.matmul %115, %117, %cst_63 {dimension_numbers = #tpu.dot_dimension_numbers<[1], [0], [0], [1], [0, 0, 1, 1], [], []>} : vector<2x25xf32>, vector<25x120xf32>, vector<2x120xf32> -> vector<2x120xf32>
    %119 = arith.addf %113, %118 : vector<2x120xf32>
    %120 = vector.extract_strided_slice %36 {offsets = [0, 14, 0], sizes = [2, 1, 25], strides = [1, 1, 1]} : vector<2x16x25xf32> to vector<2x1x25xf32>
    %121 = vector.shape_cast %120 : vector<2x1x25xf32> to vector<2x25xf32>
    %c14 = arith.constant 14 : index
    %c0_64 = arith.constant 0 : index
    %c0_65 = arith.constant 0 : index
    %122 = vector.load %arg4[%c14, %c0_64, %c0_65] : memref<16x25x120xf32, #tpu.memory_space<vmem>>, vector<1x25x120xf32>
    %123 = vector.shape_cast %122 : vector<1x25x120xf32> to vector<25x120xf32>
    %cst_66 = arith.constant dense<0.000000e+00> : vector<2x120xf32>
    %124 = tpu.matmul %121, %123, %cst_66 {dimension_numbers = #tpu.dot_dimension_numbers<[1], [0], [0], [1], [0, 0, 1, 1], [], []>} : vector<2x25xf32>, vector<25x120xf32>, vector<2x120xf32> -> vector<2x120xf32>
    %125 = arith.addf %119, %124 : vector<2x120xf32>
    %126 = vector.extract_strided_slice %36 {offsets = [0, 15, 0], sizes = [2, 1, 25], strides = [1, 1, 1]} : vector<2x16x25xf32> to vector<2x1x25xf32>
    %127 = vector.shape_cast %126 : vector<2x1x25xf32> to vector<2x25xf32>
    %c15 = arith.constant 15 : index
    %c0_67 = arith.constant 0 : index
    %c0_68 = arith.constant 0 : index
    %128 = vector.load %arg4[%c15, %c0_67, %c0_68] : memref<16x25x120xf32, #tpu.memory_space<vmem>>, vector<1x25x120xf32>
    %129 = vector.shape_cast %128 : vector<1x25x120xf32> to vector<25x120xf32>
    %cst_69 = arith.constant dense<0.000000e+00> : vector<2x120xf32>
    %130 = tpu.matmul %127, %129, %cst_69 {dimension_numbers = #tpu.dot_dimension_numbers<[1], [0], [0], [1], [0, 0, 1, 1], [], []>} : vector<2x25xf32>, vector<25x120xf32>, vector<2x120xf32> -> vector<2x120xf32>
    %131 = arith.addf %125, %130 : vector<2x120xf32>
    %c0_70 = arith.constant 0 : index
    %c0_71 = arith.constant 0 : index
    %132 = vector.load %arg5[%c0_70, %c0_71] : memref<1x120xf32, #tpu.memory_space<vmem>>, vector<1x120xf32>
    %133 = vector.broadcast %132 : vector<1x120xf32> to vector<2x120xf32>
    %134 = arith.addf %131, %133 : vector<2x120xf32>
    %cst_72 = arith.constant 0.000000e+00 : f32
    %135 = vector.broadcast %cst_72 : f32 to vector<2x120xf32>
    %136 = arith.maximumf %134, %135 : vector<2x120xf32>
    %c0_73 = arith.constant 0 : index
    %c0_74 = arith.constant 0 : index
    %137 = vector.load %arg6[%c0_73, %c0_74] : memref<120x84xf32, #tpu.memory_space<vmem>>, vector<120x84xf32>
    %cst_75 = arith.constant dense<0.000000e+00> : vector<2x84xf32>
    %138 = tpu.matmul %136, %137, %cst_75 {dimension_numbers = #tpu.dot_dimension_numbers<[1], [0], [0], [1], [0, 0, 1, 1], [], []>} : vector<2x120xf32>, vector<120x84xf32>, vector<2x84xf32> -> vector<2x84xf32>
    %c0_76 = arith.constant 0 : index
    %c0_77 = arith.constant 0 : index
    %139 = vector.load %arg7[%c0_76, %c0_77] : memref<1x84xf32, #tpu.memory_space<vmem>>, vector<1x84xf32>
    %140 = vector.broadcast %139 : vector<1x84xf32> to vector<2x84xf32>
    %141 = arith.addf %138, %140 : vector<2x84xf32>
    %cst_78 = arith.constant 0.000000e+00 : f32
    %142 = vector.broadcast %cst_78 : f32 to vector<2x84xf32>
    %143 = arith.maximumf %141, %142 : vector<2x84xf32>
    %c0_79 = arith.constant 0 : index
    %c0_80 = arith.constant 0 : index
    %144 = vector.load %arg8[%c0_79, %c0_80] : memref<84x10xf32, #tpu.memory_space<vmem>>, vector<84x10xf32>
    %cst_81 = arith.constant dense<0.000000e+00> : vector<2x10xf32>
    %145 = tpu.matmul %143, %144, %cst_81 {dimension_numbers = #tpu.dot_dimension_numbers<[1], [0], [0], [1], [0, 0, 1, 1], [], []>} : vector<2x84xf32>, vector<84x10xf32>, vector<2x10xf32> -> vector<2x10xf32>
    %c0_82 = arith.constant 0 : index
    %c0_83 = arith.constant 0 : index
    %146 = vector.load %arg9[%c0_82, %c0_83] : memref<1x10xf32, #tpu.memory_space<vmem>>, vector<1x10xf32>
    %147 = vector.broadcast %146 : vector<1x10xf32> to vector<2x10xf32>
    %148 = arith.addf %145, %147 : vector<2x10xf32>
    %c0_84 = arith.constant 0 : index
    %c0_85 = arith.constant 0 : index
    %149 = vector.load %arg10[%c0_84, %c0_85] : memref<2x10xf32, #tpu.memory_space<vmem>>, vector<2x10xf32>
    tpu.vector_store %arg10[%c0_84, %c0_85], %148 {strides = array<i32>} : memref<2x10xf32, #tpu.memory_space<vmem>>, vector<2x10xf32>,
    return
  }
  func.func @transform_0(%arg0: i32) -> (i32, i32, i32) {
    %c0_i32 = arith.constant 0 : i32
    %c0_i32_0 = arith.constant 0 : i32
    %c0_i32_1 = arith.constant 0 : i32
    return %arg0, %c0_i32, %c0_i32_0 : i32, i32, i32
  }
  func.func @transform_1(%arg0: i32) -> (i32, i32) {
    %c0_i32 = arith.constant 0 : i32
    %c0_i32_0 = arith.constant 0 : i32
    %c0_i32_1 = arith.constant 0 : i32
    return %c0_i32, %c0_i32_0 : i32, i32
  }
  func.func @transform_2(%arg0: i32) -> (i32, i32) {
    %c0_i32 = arith.constant 0 : i32
    %c0_i32_0 = arith.constant 0 : i32
    %c0_i32_1 = arith.constant 0 : i32
    return %c0_i32, %c0_i32_0 : i32, i32
  }
  func.func @transform_3(%arg0: i32) -> (i32, i32, i32) {
    %c0_i32 = arith.constant 0 : i32
    %c0_i32_0 = arith.constant 0 : i32
    %c0_i32_1 = arith.constant 0 : i32
    %c0_i32_2 = arith.constant 0 : i32
    return %c0_i32, %c0_i32_0, %c0_i32_1 : i32, i32, i32
  }
  func.func @transform_4(%arg0: i32) -> (i32, i32) {
    %c0_i32 = arith.constant 0 : i32
    %c0_i32_0 = arith.constant 0 : i32
    %c0_i32_1 = arith.constant 0 : i32
    return %c0_i32, %c0_i32_0 : i32, i32
  }
  func.func @transform_5(%arg0: i32) -> (i32, i32) {
    %c0_i32 = arith.constant 0 : i32
    %c0_i32_0 = arith.constant 0 : i32
    %c0_i32_1 = arith.constant 0 : i32
    return %c0_i32, %c0_i32_0 : i32, i32
  }
  func.func @transform_6(%arg0: i32) -> (i32, i32) {
    %c0_i32 = arith.constant 0 : i32
    %c0_i32_0 = arith.constant 0 : i32
    %c0_i32_1 = arith.constant 0 : i32
    return %c0_i32, %c0_i32_0 : i32, i32
  }
  func.func @transform_7(%arg0: i32) -> (i32, i32) {
    %c0_i32 = arith.constant 0 : i32
    %c0_i32_0 = arith.constant 0 : i32
    %c0_i32_1 = arith.constant 0 : i32
    return %c0_i32, %c0_i32_0 : i32, i32
  }
  func.func @transform_8(%arg0: i32) -> (i32, i32) {
    %c0_i32 = arith.constant 0 : i32
    %c0_i32_0 = arith.constant 0 : i32
    %c0_i32_1 = arith.constant 0 : i32
    return %c0_i32, %c0_i32_0 : i32, i32
  }
  func.func @transform_9(%arg0: i32) -> (i32, i32) {
    %c0_i32 = arith.constant 0 : i32
    %c0_i32_0 = arith.constant 0 : i32
    return %arg0, %c0_i32 : i32, i32
  }
}

</mosaic_0001>

<bundles_post_ra>
// kernel: simple_cnn_forward.2
= control target key start
LH: loop header
LB: loop body
LE: loop exit
PB: predicated region body
PF: predicated region fallthrough
CT: control target
= control target key end

     0   :  { %8 = vsyncpa [#allocation3], 0  ;;  %s1349_s0 = inlined_call_operand.hbm [shape: f32[2,4,75,196], index: 0, kind: input, shape index: {}]   ;;  %s1350_s1 = inlined_call_operand.hbm [shape: f32[6,75], index: 1, kind: input, shape index: {}]   ;;  %s1351_s2 = inlined_call_operand.hbm [shape: f32[6,1], index: 2, kind: input, shape index: {}]   ;;  %s1352_s3 = inlined_call_operand.hbm [shape: f32[2,6,196], index: 3, kind: output, shape index: {}]  }
   0x1   :  { %9 = vsyncpa [#allocation6], 0 }
   0x2   :  { %10 = vsyncpa [#allocation4], 0  ;;  %s1195_s12 = smov [#allocation5]   ;;  %s1196_s14 = smov [#allocation2]  }
   0x3   :  { %s29_s13 = sshll.u32 %s1195_s12, 4  ;;  %s16_s15 = sshll.u32 %s1196_s14, 4  ;;  %s30_s13 = int_to_ptr.vmem [resolvable:$true] %s29_s13  ;;  %s1224_s15 = int_to_ptr.vmem [resolvable:$true] %s16_s15 }
   0x4   :  { %s1101_s18 = scalar_lea.hbm %s1350_s1, 128 }
   0x5   :  { %p1102_p0 = scmp.ne.s32.totalorder %s1350_s1, %s1101_s18  ;;  %p1105_p1 = scmp.lt.u32.totalorder %s1101_s18, %s1350_s1 }
   0x7   :  { %p1107_p2 = pnand %p1105_p1, %p1102_p0 }
   0x9   :  { %1110 = shalt.err (!%p1107_p2)
}
   0xa   :  { %s1111_s23 = scalar_lea.vmem %s30_s13, 128  ;;  %p1116_p4 = scmp.lt.s32.totalorder %s30_s13, %s30_s13 }
   0xb   :  { %p1112_p3 = scmp.ne.s32.totalorder %s30_s13, %s1111_s23  ;;  %p1117_p5 = scmp.lt.s32.totalorder %s1111_s23, %s1111_s23 }
   0xd   :  { %p1118_p6 = por %p1117_p5, %p1116_p4 }
   0xf   :  { %p1119_p7 = pnand %p1118_p6, %p1112_p3 }
  0x11   :  { %1122 = shalt.err (!%p1119_p7)
}
  0x12   :  { %32 = dma.hbm_to_vmem [thread:$0]  %s1350_s1, 128, %s30_s13, [#allocation6]  }
  0x13   :  { %s1123_s28 = scalar_lea.hbm %s1349_s0, 20480 }
  0x14   :  { %p1124_p8 = scmp.ne.s32.totalorder %s1349_s0, %s1123_s28  ;;  %p1127_p9 = scmp.lt.u32.totalorder %s1123_s28, %s1349_s0 }
  0x16   :  { %p1129_p10 = pnand %p1127_p9, %p1124_p8 }
  0x18   :  { %1132 = shalt.err (!%p1129_p10)
}
  0x19   :  { %s1133_s6 = scalar_lea.vmem %s1224_s15, 20480  ;;  %p1138_p12 = scmp.lt.s32.totalorder %s1224_s15, %s1224_s15 }
  0x1a   :  { %p1134_p11 = scmp.ne.s32.totalorder %s1224_s15, %s1133_s6  ;;  %p1139_p13 = scmp.lt.s32.totalorder %s1133_s6, %s1133_s6 }
  0x1c   :  { %p1140_p0 = por %p1139_p13, %p1138_p12 }
  0x1e   :  { %p1141_p1 = pnand %p1140_p0, %p1134_p11 }
  0x20   :  { %1144 = shalt.err (!%p1141_p1)
}
  0x21   :  { %s1197_s1 = smov 256   ;;  %s1198_s7 = smov 16  }
  0x22   :  { %22 = dma.hbm_to_vmem [thread:$0]  %s1349_s0, 20480, %s1224_s15, [#allocation3], %s1197_s1, %s1197_s1, %s1198_s7  }
  0x23   :  { %s1199_s10 = smov [#allocation7]   ;;  %s1145_s14 = scalar_lea.hbm %s1351_s2, 128 }
  0x24   :  { %s39_s11 = sshll.u32 %s1199_s10, 4  ;;  %p1146_p2 = scmp.ne.s32.totalorder %s1351_s2, %s1145_s14  ;;  %s40_s11 = int_to_ptr.vmem [resolvable:$true] %s39_s11 }
  0x25   :  { %p1149_p3 = scmp.lt.u32.totalorder %s1145_s14, %s1351_s2 }
  0x27   :  { %p1151_p4 = pnand %p1149_p3, %p1146_p2 }
  0x29   :  { %1154 = shalt.err (!%p1151_p4)
}
  0x2a   :  { %s1155_s20 = scalar_lea.vmem %s40_s11, 128  ;;  %p1160_p6 = scmp.lt.s32.totalorder %s40_s11, %s40_s11 }
  0x2b   :  { %p1156_p5 = scmp.ne.s32.totalorder %s40_s11, %s1155_s20  ;;  %p1161_p7 = scmp.lt.s32.totalorder %s1155_s20, %s1155_s20 }
  0x2d   :  { %p1162_p8 = por %p1161_p7, %p1160_p6 }
  0x2f   :  { %p1163_p9 = pnand %p1162_p8, %p1156_p5 }
  0x31   :  { %1166 = shalt.err (!%p1163_p9)
}
  0x32   :  { %42 = dma.hbm_to_vmem [thread:$0]  %s1351_s2, 128, %s40_s11, [#allocation6]  }
  0x33   :  { %1189 = dma.done.wait [#allocation3], 20480  }
  0x34   :  { %1190 = vsyncadd [#allocation3], 4294946816 }
  0x35   :  { %1191 = dma.done.wait [#allocation6], 256  }
  0x36   :  { %1192 = vsyncadd [#allocation6], 4294967040  ;;  %v1200_v0 = vmov 0.0   ;;  %v1201_v1 = vmov 0   ;;  %v55_v2 = vld [vmem:[#allocation2 + $0x8] sm:$0xff]  ;;  %v57_v3 = vld [vmem:[#allocation2 + $0x18] sm:$0xff] }
  0x37   :  { %149 = vmatprep.mubr.f32.mxu0 %v1200_v0  ;;  %247 = vmatprep.mubr.f32.mxu1 %v1200_v0  ;;  %v158_v4 = vld [vmem:[#allocation2 + $0xa8] sm:$0xff]  ;;  %v915_v5 = vpack.c.bf16 %v57_v3, %v55_v2  ;;  %v160_v6 = vld [vmem:[#allocation2 + $0xb8] sm:$0xff]  ;;  %v54_v7 = vld [vmem:[#allocation2] sm:$0xff]  ;;  %vm78_vm0 = vcmask 1042432   ;;  %vm1202_vm1 = vmmov 1   ;;  %vm74_vm3 = vcmask 613376  }
  0x38   :  { %1100 = vset.pattern.permute.xlu0 %v1201_v1  ;;  %v56_v8 = vld [vmem:[#allocation2 + $0x10] sm:$0xff]  ;;  %v937_v9 = vpack.c.bf16 %v160_v6, %v158_v4  ;;  %v157_v11 = vld [vmem:[#allocation2 + $0xa0] sm:$0xff]  ;;  %v59_v13 = vld [vmem:[#allocation2 + $0x28] sm:$0xff]  ;;  %vm466_vm4 = vcmask 553984   ;;  %s1203_s2 = smov [#allocation8]  }
  0x39   :  { %v917_v10 = vpack.c.bf16 %v56_v8, %v54_v7  ;;  %v159_v12 = vld [vmem:[#allocation2 + $0xb0] sm:$0xff]  ;;  %916 = vmatprep.subr.bf16.mxu0 %v915_v5  ;;  %v61_v15 = vld [vmem:[#allocation2 + $0x38] sm:$0xff]  ;;  %v162_v16 = vld [vmem:[#allocation2 + $0xc8] sm:$0xff]  ;;  %s878_s21 = sshll.u32 %s1203_s2, 4  ;;  %s879_s21 = int_to_ptr.vmem [resolvable:$true] %s878_s21 }
  0x3a   :  { %v939_v14 = vpack.c.bf16 %v159_v12, %v157_v11  ;;  %v164_v17 = vld [vmem:[#allocation2 + $0xd8] sm:$0xff]  ;;  %938 = vmatprep.subr.bf16.mxu1 %v937_v9  ;;  %v919_v18 = vpack.c.bf16 %v61_v15, %v59_v13  ;;  %v58_v20 = vld [vmem:[#allocation2 + $0x20] sm:$0xff]  ;;  %v60_v21 = vld [vmem:[#allocation2 + $0x30] sm:$0xff]  ;;  %s1167_s22 = scalar_lea.vmem %s879_s21, 512  ;;  %p1172_p11 = scmp.lt.s32.totalorder %s879_s21, %s879_s21 }
  0x3b   :  { %918 = vmatpush1.bf16.msra.mxu0 %v917_v10  ;;  %v941_v19 = vpack.c.bf16 %v164_v17, %v162_v16  ;;  %v161_v22 = vld [vmem:[#allocation2 + $0xc0] sm:$0xff]  ;;  %v921_v23 = vpack.c.bf16 %v60_v21, %v58_v20  ;;  %v163_v24 = vld [vmem:[#allocation2 + $0xd0] sm:$0xff]  ;;  %v63_v25 = vld [vmem:[#allocation2 + $0x48] sm:$0xff]  ;;  %p1168_p10 = scmp.ne.s32.totalorder %s879_s21, %s1167_s22  ;;  %p1173_p12 = scmp.lt.s32.totalorder %s1167_s22, %s1167_s22 }
  0x3c   :  { %940 = vmatpush1.bf16.msra.mxu1 %v939_v14  ;;  %v65_v26 = vld [vmem:[#allocation2 + $0x58] sm:$0xff]  ;;  %920 = vmatprep.subr.bf16.mxu0 %v919_v18  ;;  %v943_v27 = vpack.c.bf16 %v163_v24, %v161_v22  ;;  %v166_v29 = vld [vmem:[#allocation2 + $0xe8] sm:$0xff]  ;;  %v62_v31 = vld [vmem:[#allocation2 + $0x40] sm:$0xff] }
  0x3d   :  { %942 = vmatprep.subr.bf16.mxu1 %v941_v19  ;;  %v923_v28 = vpack.c.bf16 %v65_v26, %v63_v25  ;;  %v168_v30 = vld [vmem:[#allocation2 + $0xf8] sm:$0xff]  ;;  %v64_v33 = vld [vmem:[#allocation2 + $0x50] sm:$0xff]  ;;  %v165_v34 = vld [vmem:[#allocation2 + $0xe0] sm:$0xff]  ;;  %p1174_p13 = por %p1173_p12, %p1172_p11 }
  0x3e   :  { %v945_v32 = vpack.c.bf16 %v168_v30, %v166_v29  ;;  %v167_v35 = vld [vmem:[#allocation2 + $0xf0] sm:$0xff]  ;;  %v925_v36 = vpack.c.bf16 %v64_v33, %v62_v31  ;;  %v67_v37 = vld [vmem:[#allocation2 + $0x68] sm:$0xff]  ;;  %v69_v38 = vld [vmem:[#allocation2 + $0x78] sm:$0xff] }
  0x3f   :  { %922 = vmatpush1.bf16.msra.mxu0 %v921_v23  ;;  %v170_v39 = vld [vmem:[#allocation2 + $0x108] sm:$0xff]  ;;  %v947_v40 = vpack.c.bf16 %v167_v35, %v165_v34  ;;  %v927_v41 = vpack.c.bf16 %v69_v38, %v67_v37  ;;  %v172_v42 = vld [vmem:[#allocation2 + $0x118] sm:$0xff]  ;;  %v66_v43 = vld [vmem:[#allocation2 + $0x60] sm:$0xff]  ;;  %p1175_p0 = pnand %p1174_p13, %p1168_p10 }
  0x40   :  { %944 = vmatpush1.bf16.msra.mxu1 %v943_v27  ;;  %924 = vmatprep.subr.bf16.mxu0 %v923_v28  ;;  %v68_v44 = vld [vmem:[#allocation2 + $0x70] sm:$0xff]  ;;  %v949_v45 = vpack.c.bf16 %v172_v42, %v170_v39  ;;  %v169_v46 = vld [vmem:[#allocation2 + $0x100] sm:$0xff]  ;;  %v71_v48 = vld [vmem:[#allocation2 + $0x88] sm:$0xff] }
  0x41   :  { %946 = vmatprep.subr.bf16.mxu1 %v945_v32  ;;  %v171_v47 = vld [vmem:[#allocation2 + $0x110] sm:$0xff]  ;;  %v73_v49 = vld [vmem:[#allocation2 + $0x98] sm:$0x7]  ;;  %v174_v50 = vld [vmem:[#allocation2 + $0x128] sm:$0xff]  ;;  %v929_v52 = vpack.c.bf16 %v68_v44, %v66_v43 }
  0x42   :  { %v176_v51 = vld [vmem:[#allocation2 + $0x138] sm:$0x7]  ;;  %vm1272_vm2 = vmpackc.low %vm78_vm0, %vm1202_vm1  ;;  %v951_v54 = vpack.c.bf16 %v171_v47, %v169_v46  ;;  %v931_v55 = vpack.c.bf16 %v73_v49, %v71_v48  ;;  %v70_v56 = vld [vmem:[#allocation2 + $0x80] sm:$0xff] }
  0x43   :  { %926 = vmatpush1.bf16.msra.mxu0 %v925_v36  ;;  %v72_v57 = vld [vmem:[#allocation2 + $0x90] sm:$0x7]  ;;  %v173_v58 = vld [vmem:[#allocation2 + $0x120] sm:$0xff]  ;;  %v953_v59 = vpack.c.bf16 %v176_v51, %v174_v50  ;;  %v258_v61 = vld [vmem:[#allocation2 + $0x148] sm:$0xff] }
  0x44   :  { %948 = vmatpush1.bf16.msra.mxu1 %v947_v40  ;;  %928 = vmatprep.subr.bf16.mxu0 %v927_v41  ;;  %v175_v60 = vld [vmem:[#allocation2 + $0x130] sm:$0x7]  ;;  %v260_v62 = vld [vmem:[#allocation2 + $0x158] sm:$0xff]  ;;  %v356_v63 = vld [vmem:[#allocation2 + $0x1e8] sm:$0xff]  ;;  %v934_v2 = vpack.c.bf16 %v72_v57, %v70_v56 }
  0x45   :  { %950 = vmatprep.subr.bf16.mxu1 %v949_v45  ;;  %v358_v1 = vld [vmem:[#allocation2 + $0x1f8] sm:$0xff]  ;;  %v956_v3 = vpack.c.bf16 %v175_v60, %v173_v58  ;;  %v959_v4 = vpack.c.bf16 %v260_v62, %v258_v61  ;;  %v257_v5 = vld [vmem:[#allocation2 + $0x140] sm:$0xff]  ;;  %v259_v6 = vld [vmem:[#allocation2 + $0x150] sm:$0xff] }
  0x46   :  { %v355_v7 = vld [vmem:[#allocation2 + $0x1e0] sm:$0xff]  ;;  %v981_v8 = vpack.c.bf16 %v358_v1, %v356_v63  ;;  %v357_v9 = vld [vmem:[#allocation2 + $0x1f0] sm:$0xff]  ;;  %v262_v10 = vld [vmem:[#allocation2 + $0x168] sm:$0xff]  ;;  %v961_v15 = vpack.c.bf16 %v259_v6, %v257_v5 }
  0x47   :  { %930 = vmatpush1.bf16.msra.mxu0 %v929_v52  ;;  %v264_v11 = vld [vmem:[#allocation2 + $0x178] sm:$0xff]  ;;  %v360_v12 = vld [vmem:[#allocation2 + $0x208] sm:$0xff]  ;;  %v1282_v14 = vld [vmem:[#allocation5] sm:$0x3f]  ;;  %v983_v16 = vpack.c.bf16 %v357_v9, %v355_v7 }
  0x48   :  { %952 = vmatpush1.bf16.msra.mxu1 %v951_v54  ;;  %933 = vmatprep.subr.msk.bf16.mxu0 %vm1272_vm2, %v931_v55  ;;  %v362_v13 = vld [vmem:[#allocation2 + $0x218] sm:$0xff]  ;;  %v963_v17 = vpack.c.bf16 %v264_v11, %v262_v10  ;;  %v261_v18 = vld [vmem:[#allocation2 + $0x160] sm:$0xff]  ;;  %v263_v19 = vld [vmem:[#allocation2 + $0x170] sm:$0xff] }
  0x49   :  { %955 = vmatprep.subr.msk.bf16.mxu1 %vm1272_vm2, %v953_v59  ;;  %v359_v20 = vld [vmem:[#allocation2 + $0x200] sm:$0xff]  ;;  %v985_v21 = vpack.c.bf16 %v362_v13, %v360_v12  ;;  %v361_v22 = vld [vmem:[#allocation2 + $0x210] sm:$0xff]  ;;  %v266_v23 = vld [vmem:[#allocation2 + $0x188] sm:$0xff]  ;;  %v965_v27 = vpack.c.bf16 %v263_v19, %v261_v18 }
  0x4a   :  { %v268_v24 = vld [vmem:[#allocation2 + $0x198] sm:$0xff]  ;;  %v364_v25 = vld [vmem:[#allocation2 + $0x228] sm:$0xff]  ;;  %v987_v28 = vpack.c.bf16 %v361_v22, %v359_v20  ;;  %v265_v30 = vld [vmem:[#allocation2 + $0x180] sm:$0xff] }
  0x4b   :  { %936 = vmatpush1.bf16.msk.msra.mxu0 %vm1272_vm2, %v934_v2  ;;  %v366_v26 = vld [vmem:[#allocation2 + $0x238] sm:$0xff]  ;;  %v967_v29 = vpack.c.bf16 %v268_v24, %v266_v23  ;;  %v267_v31 = vld [vmem:[#allocation2 + $0x190] sm:$0xff]  ;;  %v363_v32 = vld [vmem:[#allocation2 + $0x220] sm:$0xff] }
  0x4c   :  { %958 = vmatpush1.bf16.msk.msra.mxu1 %vm1272_vm2, %v956_v3  ;;  %960 = vmatprep.subr.bf16.mxu0 %v959_v4  ;;  %v989_v33 = vpack.c.bf16 %v366_v26, %v364_v25  ;;  %v365_v34 = vld [vmem:[#allocation2 + $0x230] sm:$0xff]  ;;  %v270_v35 = vld [vmem:[#allocation2 + $0x1a8] sm:$0xff]  ;;  %v272_v36 = vld [vmem:[#allocation2 + $0x1b8] sm:$0xff]  ;;  %v969_v39 = vpack.c.bf16 %v267_v31, %v265_v30 }
  0x4d   :  { %982 = vmatprep.subr.bf16.mxu1 %v981_v8  ;;  %v368_v37 = vld [vmem:[#allocation2 + $0x248] sm:$0xff]  ;;  %v370_v38 = vld [vmem:[#allocation2 + $0x258] sm:$0xff]  ;;  %v991_v40 = vpack.c.bf16 %v365_v34, %v363_v32  ;;  %v971_v41 = vpack.c.bf16 %v272_v36, %v270_v35  ;;  %v269_v42 = vld [vmem:[#allocation2 + $0x1a0] sm:$0xff] }
  0x4e   :  { %893 = vmatmul.mubr.msk.f32.vlgmr.msra.gmra.mrb[0].mxu0 %vm74_vm3, %v1282_v14  ;;  %v271_v43 = vld [vmem:[#allocation2 + $0x1b0] sm:$0xff]  ;;  %v367_v44 = vld [vmem:[#allocation2 + $0x240] sm:$0xff]  ;;  %v993_v45 = vpack.c.bf16 %v370_v38, %v368_v37  ;;  %v274_v47 = vld [vmem:[#allocation2 + $0x1c8] sm:$0xff] }
  0x4f   :  { %896 = vmatmul.mubr.msk.f32.vlgmr.msra.gmra.mrb[0].mxu1 %vm74_vm3, %v1282_v14  ;;  %962 = vmatpush1.bf16.msra.mxu0 %v961_v15  ;;  %v369_v46 = vld [vmem:[#allocation2 + $0x250] sm:$0xff]  ;;  %v276_v48 = vld [vmem:[#allocation2 + $0x1d8] sm:$0x7]  ;;  %v372_v49 = vld [vmem:[#allocation2 + $0x268] sm:$0xff]  ;;  %v973_v51 = vpack.c.bf16 %v271_v43, %v269_v42 }
  0x50   :  { %984 = vmatpush1.bf16.msra.mxu1 %v983_v16  ;;  %964 = vmatprep.subr.bf16.mxu0 %v963_v17  ;;  %v374_v50 = vld [vmem:[#allocation2 + $0x278] sm:$0x7]  ;;  %v995_v52 = vpack.c.bf16 %v369_v46, %v367_v44  ;;  %v975_v54 = vpack.c.bf16 %v276_v48, %v274_v47  ;;  %v273_v55 = vld [vmem:[#allocation2 + $0x1c0] sm:$0xff]  ;;  %v275_v56 = vld [vmem:[#allocation2 + $0x1d0] sm:$0x7] }
  0x51   :  { %986 = vmatprep.subr.bf16.mxu1 %v985_v21  ;;  %347 = vmatprep.mubr.f32.mxu0 %v1200_v0  ;;  %v371_v57 = vld [vmem:[#allocation2 + $0x260] sm:$0xff]  ;;  %v997_v58 = vpack.c.bf16 %v374_v50, %v372_v49  ;;  %v373_v59 = vld [vmem:[#allocation2 + $0x270] sm:$0x7]  ;;  %v470_v60 = vld [vmem:[#allocation2 + $0x288] sm:$0xff]  ;;  %v978_v1 = vpack.c.bf16 %v275_v56, %v273_v55 }
  0x52   :  { %445 = vmatprep.mubr.f32.mxu1 %v1200_v0  ;;  %v472_v61 = vld [vmem:[#allocation2 + $0x298] sm:$0xff]  ;;  %v568_v62 = vld [vmem:[#allocation2 + $0x328] sm:$0xff]  ;;  %v1000_v2 = vpack.c.bf16 %v373_v59, %v371_v57  ;;  %v469_v4 = vld [vmem:[#allocation2 + $0x280] sm:$0xff] }
  0x53   :  { %966 = vmatpush1.bf16.msra.mxu0 %v965_v27  ;;  %v570_v63 = vld [vmem:[#allocation2 + $0x338] sm:$0xff]  ;;  %v1003_v3 = vpack.c.bf16 %v472_v61, %v470_v60  ;;  %v471_v5 = vld [vmem:[#allocation2 + $0x290] sm:$0xff]  ;;  %v567_v6 = vld [vmem:[#allocation2 + $0x320] sm:$0xff] }
  0x54   :  { %988 = vmatpush1.bf16.msra.mxu1 %v987_v28  ;;  %968 = vmatprep.subr.bf16.mxu0 %v967_v29  ;;  %v1025_v7 = vpack.c.bf16 %v570_v63, %v568_v62  ;;  %v569_v8 = vld [vmem:[#allocation2 + $0x330] sm:$0xff]  ;;  %v474_v9 = vld [vmem:[#allocation2 + $0x2a8] sm:$0xff]  ;;  %v476_v10 = vld [vmem:[#allocation2 + $0x2b8] sm:$0xff]  ;;  %v1005_v13 = vpack.c.bf16 %v471_v5, %v469_v4 }
  0x55   :  { %990 = vmatprep.subr.bf16.mxu1 %v989_v33  ;;  %v572_v11 = vld [vmem:[#allocation2 + $0x348] sm:$0xff]  ;;  %v574_v12 = vld [vmem:[#allocation2 + $0x358] sm:$0xff]  ;;  %v1027_v15 = vpack.c.bf16 %v569_v8, %v567_v6  ;;  %v1007_v16 = vpack.c.bf16 %v476_v10, %v474_v9  ;;  %v473_v17 = vld [vmem:[#allocation2 + $0x2a0] sm:$0xff] }
  0x56   :  { %v475_v18 = vld [vmem:[#allocation2 + $0x2b0] sm:$0xff]  ;;  %v571_v19 = vld [vmem:[#allocation2 + $0x340] sm:$0xff]  ;;  %v1029_v20 = vpack.c.bf16 %v574_v12, %v572_v11  ;;  %v478_v22 = vld [vmem:[#allocation2 + $0x2c8] sm:$0xff] }
  0x57   :  { %970 = vmatpush1.bf16.msra.mxu0 %v969_v39  ;;  %v573_v21 = vld [vmem:[#allocation2 + $0x350] sm:$0xff]  ;;  %v480_v23 = vld [vmem:[#allocation2 + $0x2d8] sm:$0xff]  ;;  %v576_v24 = vld [vmem:[#allocation2 + $0x368] sm:$0xff]  ;;  %v1009_v26 = vpack.c.bf16 %v475_v18, %v473_v17 }
  0x58   :  { %992 = vmatpush1.bf16.msra.mxu1 %v991_v40  ;;  %972 = vmatprep.subr.bf16.mxu0 %v971_v41  ;;  %v578_v25 = vld [vmem:[#allocation2 + $0x378] sm:$0xff]  ;;  %v1031_v27 = vpack.c.bf16 %v573_v21, %v571_v19  ;;  %v1011_v28 = vpack.c.bf16 %v480_v23, %v478_v22  ;;  %v477_v29 = vld [vmem:[#allocation2 + $0x2c0] sm:$0xff]  ;;  %v479_v30 = vld [vmem:[#allocation2 + $0x2d0] sm:$0xff] }
  0x59   :  { %994 = vmatprep.subr.bf16.mxu1 %v993_v45  ;;  %v575_v31 = vld [vmem:[#allocation2 + $0x360] sm:$0xff]  ;;  %v1033_v32 = vpack.c.bf16 %v578_v25, %v576_v24  ;;  %v577_v33 = vld [vmem:[#allocation2 + $0x370] sm:$0xff]  ;;  %v482_v34 = vld [vmem:[#allocation2 + $0x2e8] sm:$0xff]  ;;  %v1013_v38 = vpack.c.bf16 %v479_v30, %v477_v29 }
  0x5a   :  { %v484_v35 = vld [vmem:[#allocation2 + $0x2f8] sm:$0xff]  ;;  %v580_v36 = vld [vmem:[#allocation2 + $0x388] sm:$0xff]  ;;  %v1035_v39 = vpack.c.bf16 %v577_v33, %v575_v31  ;;  %v481_v41 = vld [vmem:[#allocation2 + $0x2e0] sm:$0xff] }
  0x5b   :  { %974 = vmatpush1.bf16.msra.mxu0 %v973_v51  ;;  %v582_v37 = vld [vmem:[#allocation2 + $0x398] sm:$0xff]  ;;  %v1015_v40 = vpack.c.bf16 %v484_v35, %v482_v34  ;;  %v483_v42 = vld [vmem:[#allocation2 + $0x2f0] sm:$0xff]  ;;  %v579_v43 = vld [vmem:[#allocation2 + $0x380] sm:$0xff] }
  0x5c   :  { %996 = vmatpush1.bf16.msra.mxu1 %v995_v52  ;;  %977 = vmatprep.subr.msk.bf16.mxu0 %vm1272_vm2, %v975_v54  ;;  %v1037_v44 = vpack.c.bf16 %v582_v37, %v580_v36  ;;  %v581_v45 = vld [vmem:[#allocation2 + $0x390] sm:$0xff]  ;;  %v486_v46 = vld [vmem:[#allocation2 + $0x308] sm:$0xff]  ;;  %v488_v47 = vld [vmem:[#allocation2 + $0x318] sm:$0x7]  ;;  %v1017_v50 = vpack.c.bf16 %v483_v42, %v481_v41 }
  0x5d   :  { %999 = vmatprep.subr.msk.bf16.mxu1 %vm1272_vm2, %v997_v58  ;;  %v584_v48 = vld [vmem:[#allocation2 + $0x3a8] sm:$0xff]  ;;  %v586_v49 = vld [vmem:[#allocation2 + $0x3b8] sm:$0x7]  ;;  %v485_v51 = vld [vmem:[#allocation2 + $0x300] sm:$0xff]  ;;  %v1039_v52 = vpack.c.bf16 %v581_v45, %v579_v43  ;;  %v1019_v54 = vpack.c.bf16 %v488_v47, %v486_v46 }
  0x5e   :  { %v487_v55 = vld [vmem:[#allocation2 + $0x310] sm:$0x7]  ;;  %v583_v56 = vld [vmem:[#allocation2 + $0x3a0] sm:$0xff]  ;;  %v53_v57 = vld [vmem:[#allocation7] sm:$0x3f]  ;;  %v1041_v58 = vpack.c.bf16 %v586_v49, %v584_v48 }
  0x5f   :  { %980 = vmatpush1.bf16.msk.msra.mxu0 %vm1272_vm2, %v978_v1  ;;  %v585_v59 = vld [vmem:[#allocation2 + $0x3b0] sm:$0x7]  ;;  %v668_v60 = vld [vmem:[#allocation2 + $0x3c8] sm:$0xff]  ;;  %v670_v61 = vld [vmem:[#allocation2 + $0x3d8] sm:$0xff]  ;;  %458 = vperm.xlu0 %1100, %v53_v57   ;;  %v1022_v1 = vpack.c.bf16 %v487_v55, %v485_v51 }
  0x60   :  { %1002 = vmatpush1.bf16.msk.msra.mxu1 %vm1272_vm2, %v1000_v2  ;;  %1004 = vmatprep.subr.bf16.mxu0 %v1003_v3  ;;  %v766_v62 = vld [vmem:[#allocation2 + $0x468] sm:$0xff]  ;;  %v768_v63 = vld [vmem:[#allocation2 + $0x478] sm:$0xff]  ;;  %v1044_v2 = vpack.c.bf16 %v585_v59, %v583_v56  ;;  %v1047_v3 = vpack.c.bf16 %v670_v61, %v668_v60  ;;  %v667_v4 = vld [vmem:[#allocation2 + $0x3c0] sm:$0xff] }
  0x61   :  { %1026 = vmatprep.subr.bf16.mxu1 %v1025_v7  ;;  %v669_v5 = vld [vmem:[#allocation2 + $0x3d0] sm:$0xff]  ;;  %v765_v6 = vld [vmem:[#allocation2 + $0x460] sm:$0xff]  ;;  %v1069_v7 = vpack.c.bf16 %v768_v63, %v766_v62  ;;  %v672_v9 = vld [vmem:[#allocation2 + $0x3e8] sm:$0xff] }
  0x62   :  { %899 = vmatmul.mubr.msk.f32.vlgmr.msra.gmra.mrb[2].mxu0 %vm74_vm3, %v1282_v14  ;;  %v767_v8 = vld [vmem:[#allocation2 + $0x470] sm:$0xff]  ;;  %v674_v10 = vld [vmem:[#allocation2 + $0x3f8] sm:$0xff]  ;;  %v770_v11 = vld [vmem:[#allocation2 + $0x488] sm:$0xff] }
  0x63   :  { %902 = vmatmul.mubr.msk.f32.vlgmr.msra.gmra.mrb[2].mxu1 %vm74_vm3, %v1282_v14  ;;  %1006 = vmatpush1.bf16.msra.mxu0 %v1005_v13  ;;  %v772_v12 = vld [vmem:[#allocation2 + $0x498] sm:$0xff]  ;;  %v1049_v13 = vpack.c.bf16 %v669_v5, %v667_v4  ;;  %v671_v17 = vld [vmem:[#allocation2 + $0x3e0] sm:$0xff]  ;;  %v673_v18 = vld [vmem:[#allocation2 + $0x3f0] sm:$0xff] }
  0x64   :  { %1028 = vmatpush1.bf16.msra.mxu1 %v1027_v15  ;;  %1008 = vmatprep.subr.bf16.mxu0 %v1007_v16  ;;  %v1071_v15 = vpack.c.bf16 %v767_v8, %v765_v6  ;;  %v1051_v16 = vpack.c.bf16 %v674_v10, %v672_v9  ;;  %v769_v19 = vld [vmem:[#allocation2 + $0x480] sm:$0xff]  ;;  %v771_v21 = vld [vmem:[#allocation2 + $0x490] sm:$0xff]  ;;  %v676_v22 = vld [vmem:[#allocation2 + $0x408] sm:$0xff] }
  0x65   :  { %1030 = vmatprep.subr.bf16.mxu1 %v1029_v20  ;;  %559 = vmatprep.mubr.f32.mxu0 %v1200_v0  ;;  %v1073_v20 = vpack.c.bf16 %v772_v12, %v770_v11  ;;  %v678_v23 = vld [vmem:[#allocation2 + $0x418] sm:$0xff]  ;;  %v774_v24 = vld [vmem:[#allocation2 + $0x4a8] sm:$0xff]  ;;  %v675_v29 = vld [vmem:[#allocation2 + $0x400] sm:$0xff] }
  0x66   :  { %657 = vmatprep.mubr.f32.mxu1 %v1200_v0  ;;  %v776_v25 = vld [vmem:[#allocation2 + $0x4b8] sm:$0xff]  ;;  %v677_v30 = vld [vmem:[#allocation2 + $0x410] sm:$0xff]  ;;  %v773_v31 = vld [vmem:[#allocation2 + $0x4a0] sm:$0xff] }
  0x67   :  { %1010 = vmatpush1.bf16.msra.mxu0 %v1009_v26  ;;  %v1053_v26 = vpack.c.bf16 %v673_v18, %v671_v17  ;;  %v775_v33 = vld [vmem:[#allocation2 + $0x4b0] sm:$0xff]  ;;  %v680_v34 = vld [vmem:[#allocation2 + $0x428] sm:$0xff]  ;;  %v682_v35 = vld [vmem:[#allocation2 + $0x438] sm:$0xff] }
  0x68   :  { %1032 = vmatpush1.bf16.msra.mxu1 %v1031_v27  ;;  %1012 = vmatprep.subr.bf16.mxu0 %v1011_v28  ;;  %v1075_v27 = vpack.c.bf16 %v771_v21, %v769_v19  ;;  %v1055_v28 = vpack.c.bf16 %v678_v23, %v676_v22  ;;  %v778_v36 = vld [vmem:[#allocation2 + $0x4c8] sm:$0xff]  ;;  %v780_v37 = vld [vmem:[#allocation2 + $0x4d8] sm:$0xff]  ;;  %v679_v41 = vld [vmem:[#allocation2 + $0x420] sm:$0xff] }
  0x69   :  { %1034 = vmatprep.subr.bf16.mxu1 %v1033_v32  ;;  %v1077_v32 = vpack.c.bf16 %v776_v25, %v774_v24  ;;  %v681_v42 = vld [vmem:[#allocation2 + $0x430] sm:$0xff]  ;;  %v777_v43 = vld [vmem:[#allocation2 + $0x4c0] sm:$0xff]  ;;  %v684_v46 = vld [vmem:[#allocation2 + $0x448] sm:$0xff] }
  0x6a   :  { %v779_v45 = vld [vmem:[#allocation2 + $0x4d0] sm:$0xff]  ;;  %v686_v47 = vld [vmem:[#allocation2 + $0x458] sm:$0x7]  ;;  %v782_v48 = vld [vmem:[#allocation2 + $0x4e8] sm:$0xff] }
  0x6b   :  { %1014 = vmatpush1.bf16.msra.mxu0 %v1013_v38  ;;  %v1057_v38 = vpack.c.bf16 %v677_v30, %v675_v29  ;;  %v784_v49 = vld [vmem:[#allocation2 + $0x4f8] sm:$0x7]  ;;  %v1063_v51 = vpack.c.bf16 %v686_v47, %v684_v46  ;;  %v781_v56 = vld [vmem:[#allocation2 + $0x4e0] sm:$0xff]  ;;  %v783_v57 = vld [vmem:[#allocation2 + $0x4f0] sm:$0x7] }
  0x6c   :  { %1036 = vmatpush1.bf16.msra.mxu1 %v1035_v39  ;;  %1016 = vmatprep.subr.bf16.mxu0 %v1015_v40  ;;  %v1079_v39 = vpack.c.bf16 %v775_v33, %v773_v31  ;;  %v1059_v40 = vpack.c.bf16 %v682_v35, %v680_v34  ;;  %v1085_v55 = vpack.c.bf16 %v784_v49, %v782_v48 }
  0x6d   :  { %1038 = vmatprep.subr.bf16.mxu1 %v1037_v44  ;;  %v1081_v44 = vpack.c.bf16 %v780_v37, %v778_v36  ;;  %v1088_v59 = vpack.c.bf16 %v783_v57, %v781_v56 }
  0x6f   :  { %1018 = vmatpush1.bf16.msra.mxu0 %v1017_v50  ;;  %v1061_v50 = vpack.c.bf16 %v681_v42, %v679_v41 }
  0x70   :  { %1040 = vmatpush1.bf16.msra.mxu1 %v1039_v52  ;;  %1021 = vmatprep.subr.msk.bf16.mxu0 %vm1272_vm2, %v1019_v54  ;;  %v683_v52 = vld [vmem:[#allocation2 + $0x440] sm:$0xff]  ;;  %v685_v54 = vld [vmem:[#allocation2 + $0x450] sm:$0x7] }
  0x71   :  { %1043 = vmatprep.subr.msk.bf16.mxu1 %vm1272_vm2, %v1041_v58  ;;  %v1066_v58 = vpack.c.bf16 %v685_v54, %v683_v52 }
  0x73   :  { %1024 = vmatpush1.bf16.msk.msra.mxu0 %vm1272_vm2, %v1022_v1 }
  0x74   :  { %1046 = vmatpush1.bf16.msk.msra.mxu1 %vm1272_vm2, %v1044_v2  ;;  %1048 = vmatprep.subr.bf16.mxu0 %v1047_v3 }
  0x75   :  { %1070 = vmatprep.subr.bf16.mxu1 %v1069_v7 }
  0x76   :  { %905 = vmatmul.mubr.msk.f32.vlgmr.msra.gmra.mrb[4].mxu0 %vm74_vm3, %v1282_v14 }
  0x77   :  { %908 = vmatmul.mubr.msk.f32.vlgmr.msra.gmra.mrb[4].mxu1 %vm74_vm3, %v1282_v14  ;;  %1050 = vmatpush1.bf16.msra.mxu0 %v1049_v13 }
  0x78   :  { %1072 = vmatpush1.bf16.msra.mxu1 %v1071_v15  ;;  %1052 = vmatprep.subr.bf16.mxu0 %v1051_v16 }
  0x79   :  { %1074 = vmatprep.subr.bf16.mxu1 %v1073_v20  ;;  %757 = vmatprep.mubr.f32.mxu0 %v1200_v0 }
  0x7a   :  { %855 = vmatprep.mubr.f32.mxu1 %v1200_v0  ;;  %v1083_v0 = vpack.c.bf16 %v779_v45, %v777_v43 }
  0x7b   :  { %1054 = vmatpush1.bf16.msra.mxu0 %v1053_v26 }
  0x7c   :  { %1076 = vmatpush1.bf16.msra.mxu1 %v1075_v27  ;;  %1056 = vmatprep.subr.bf16.mxu0 %v1055_v28 }
  0x7d   :  { %1078 = vmatprep.subr.bf16.mxu1 %v1077_v32 }
  0x7f   :  { %1058 = vmatpush1.bf16.msra.mxu0 %v1057_v38 }
  0x80   :  { %1080 = vmatpush1.bf16.msra.mxu1 %v1079_v39  ;;  %1060 = vmatprep.subr.bf16.mxu0 %v1059_v40 }
  0x81   :  { %1082 = vmatprep.subr.bf16.mxu1 %v1081_v44 }
  0x83   :  { %1062 = vmatpush1.bf16.msra.mxu0 %v1061_v50 }
  0x84   :  { %1084 = vmatpush1.bf16.msra.mxu1 %v1083_v0  ;;  %1065 = vmatprep.subr.msk.bf16.mxu0 %vm1272_vm2, %v1063_v51 }
  0x85   :  { %1087 = vmatprep.subr.msk.bf16.mxu1 %vm1272_vm2, %v1085_v55 }
  0x87   :  { %1068 = vmatpush1.bf16.msk.msra.mxu0 %vm1272_vm2, %v1066_v58 }
  0x88   :  { %1090 = vmatpush1.bf16.msk.msra.mxu1 %vm1272_vm2, %v1088_v59 }
  0x8a   :  { %911 = vmatmul.mubr.msk.f32.vlgmr.msra.gmra.mrb[6].mxu0 %vm74_vm3, %v1282_v14 }
  0x8b   :  { %914 = vmatmul.mubr.msk.f32.vlgmr.msra.gmra.mrb[6].mxu1 %vm74_vm3, %v1282_v14 }
  0xde   :  { %v459_v53 = vpop.permute.xlu0 %458 }
 0x121   :  { %v151_v60 = vpop.f32.mrb[0].mxu0 }
 0x122   :  { %v249_v61 = vpop.f32.mrb[0].mxu1  ;;  %v153_v62 = vpop.f32.mrb[1].mxu0 }
 0x123   :  { %v254_v63 = vmax.f32 %v151_v60, %v249_v61  ;;  %v251_v1 = vpop.f32.mrb[1].mxu1 }
 0x124   :  { %v255_v2 = vmax.f32 %v153_v62, %v251_v1 }
 0x135   :  { %v349_v3 = vpop.f32.mrb[2].mxu0 }
 0x136   :  { %v447_v4 = vpop.f32.mrb[2].mxu1  ;;  %v351_v5 = vpop.f32.mrb[3].mxu0 }
 0x137   :  { %v452_v6 = vmax.f32 %v349_v3, %v447_v4  ;;  %v449_v7 = vpop.f32.mrb[3].mxu1 }
 0x138   :  { %v453_v8 = vmax.f32 %v351_v5, %v449_v7 }
 0x139   :  { %v454_v9 = vmax.f32 %v254_v63, %v452_v6 }
 0x13a   :  { %v455_v10 = vmax.f32 %v255_v2, %v453_v8 }
 0x13b   :  { %v461_v11 = vadd.f32 %v459_v53, %v454_v9 }
 0x13c   :  { %v462_v12 = vadd.f32 %v459_v53, %v455_v10 }
 0x13d   :  { %v463_v13 = vmax.f32 %v461_v11, 0.0 }
 0x13e   :  { %v464_v14 = vmax.f32 %v462_v12, 0.0 }
 0x13f   :  { %465 = vst [vmem:[#allocation8] sm:$0x3f] %v463_v13 }
 0x140   :  { %467 = vst.msk [vmem:[#allocation8 + $0x8] sm:$0x3f] %vm466_vm4, %v464_v14 }
 0x149   :  { %v561_v15 = vpop.f32.mrb[4].mxu0 }
 0x14a   :  { %v659_v16 = vpop.f32.mrb[4].mxu1  ;;  %v563_v17 = vpop.f32.mrb[5].mxu0 }
 0x14b   :  { %v664_v18 = vmax.f32 %v561_v15, %v659_v16  ;;  %v661_v19 = vpop.f32.mrb[5].mxu1 }
 0x14c   :  { %v665_v20 = vmax.f32 %v563_v17, %v661_v19 }
 0x15d   :  { %v759_v21 = vpop.f32.mrb[6].mxu0 }
 0x15e   :  { %v857_v22 = vpop.f32.mrb[6].mxu1  ;;  %v761_v23 = vpop.f32.mrb[7].mxu0 }
 0x15f   :  { %v862_v24 = vmax.f32 %v759_v21, %v857_v22  ;;  %v859_v25 = vpop.f32.mrb[7].mxu1 }
 0x160   :  { %v863_v26 = vmax.f32 %v761_v23, %v859_v25 }
 0x161   :  { %v864_v27 = vmax.f32 %v664_v18, %v862_v24 }
 0x162   :  { %v865_v28 = vmax.f32 %v665_v20, %v863_v26 }
 0x163   :  { %v866_v29 = vadd.f32 %v864_v27, %v459_v53 }
 0x164   :  { %v867_v30 = vadd.f32 %v865_v28, %v459_v53 }
 0x165   :  { %v868_v31 = vmax.f32 %v866_v29, 0.0 }
 0x166   :  { %v869_v32 = vmax.f32 %v867_v30, 0.0 }
 0x167   :  { %871 = vst [vmem:[#allocation8 + $0x10] sm:$0x3f] %v868_v31 }
 0x168   :  { %872 = vst.msk [vmem:[#allocation8 + $0x18] sm:$0x3f] %vm466_vm4, %v869_v32 }
 0x169   :  { %1178 = shalt.err (!%p1175_p0)
}
 0x16a   :  { %s1179_s25 = scalar_lea.hbm %s1352_s3, 512 }
 0x16b   :  { %p1180_p1 = scmp.ne.s32.totalorder %s1352_s3, %s1179_s25  ;;  %p1183_p2 = scmp.lt.u32.totalorder %s1179_s25, %s1352_s3 }
 0x16d   :  { %p1185_p3 = pnand %p1183_p2, %p1180_p1 }
 0x16f   :  { %1188 = shalt.err (!%p1185_p3)
}
 0x170   :  { %884 = dma.vmem_to_hbm [thread:$0]  %s879_s21, 512, %s1352_s3, [#allocation4], %s1197_s1, %s1197_s1, %s1198_s7  }
 0x171   :  { %1193 = dma.done.wait [#allocation4], 512  }
 0x172   :  { %1194 = vsyncadd [#allocation4], 4294966784 }
 0x173   :  { %888 = vsyncpa [#allocation3], 1 }
 0x174   :  { %889 = vsyncpa [#allocation6], 1 }
 0x175   :  { %890 = vsyncpa [#allocation4], 1 }

// kernel: simple_cnn_forward.3
= control target key start
LH: loop header
LB: loop body
LE: loop exit
PB: predicated region body
PF: predicated region fallthrough
CT: control target
= control target key end

     0   :  { %14 = vsyncpa [#allocation4], 0  ;;  %s3258_s0 = inlined_call_operand.hbm [shape: f32[2,150,100], index: 0, kind: input, shape index: {}]   ;;  %s3259_s1 = inlined_call_operand.hbm [shape: f32[16,150], index: 1, kind: input, shape index: {}]   ;;  %s3260_s2 = inlined_call_operand.hbm [shape: f32[16,1], index: 2, kind: input, shape index: {}]   ;;  %s3261_s3 = inlined_call_operand.hbm [shape: f32[16,25,120], index: 3, kind: input, shape index: {}]   ;;  %s3262_s4 = inlined_call_operand.hbm [shape: f32[1,120], index: 4, kind: input, shape index: {}]   ;;  %s3263_s5 = inlined_call_operand.hbm [shape: f32[120,84], index: 5, kind: input, shape index: {}]   ;;  %s3264_s6 = inlined_call_operand.hbm [shape: f32[1,84], index: 6, kind: input, shape index: {}]   ;;  %s3265_s7 = inlined_call_operand.hbm [shape: f32[84,10], index: 7, kind: input, shape index: {}]   ;;  %s3266_s8 = inlined_call_operand.hbm [shape: f32[1,10], index: 8, kind: input, shape index: {}]   ;;  %s3267_s9 = inlined_call_operand.hbm [shape: f32[2,10], index: 9, kind: output, shape index: {}]  }
   0x1   :  { %15 = vsyncpa [#allocation7], 0 }
   0x2   :  { %16 = vsyncpa [#allocation10], 0 }
   0x3   :  { %17 = vsyncpa [#allocation13], 0 }
   0x4   :  { %18 = vsyncpa [#allocation16], 0 }
   0x5   :  { %19 = vsyncpa [#allocation5], 0  ;;  %s2834_s30 = smov [#allocation6]   ;;  %s2602_s13 = scalar_lea.hbm %s3259_s1, 512 }
   0x6   :  { %s37_s10 = sshll.u32 %s2834_s30, 4  ;;  %p2603_p0 = scmp.ne.s32.totalorder %s3259_s1, %s2602_s13  ;;  %s38_s10 = int_to_ptr.vmem [resolvable:$true] %s37_s10 }
   0x7   :  { %p2606_p1 = scmp.lt.u32.totalorder %s2602_s13, %s3259_s1 }
   0x9   :  { %p2608_p2 = pnand %p2606_p1, %p2603_p0 }
   0xb   :  { %2611 = shalt.err (!%p2608_p2)
}
   0xc   :  { %s2612_s18 = scalar_lea.vmem %s38_s10, 512  ;;  %p2617_p4 = scmp.lt.s32.totalorder %s38_s10, %s38_s10 }
   0xd   :  { %p2613_p3 = scmp.ne.s32.totalorder %s38_s10, %s2612_s18  ;;  %p2618_p5 = scmp.lt.s32.totalorder %s2612_s18, %s2612_s18 }
   0xf   :  { %p2619_p6 = por %p2618_p5, %p2617_p4 }
  0x11   :  { %p2620_p7 = pnand %p2619_p6, %p2613_p3 }
  0x13   :  { %2623 = shalt.err (!%p2620_p7)
}
  0x14   :  { %s2835_s19 = smov 256   ;;  %s2836_s20 = smov 16  }
  0x15   :  { %43 = dma.hbm_to_vmem [thread:$0]  %s3259_s1, 512, %s38_s10, [#allocation7], %s2835_s19, %s2835_s19, %s2836_s20  }
  0x16   :  { %s2837_s23 = smov [#allocation9]   ;;  %s2838_s25 = smov [#allocation12]  }
  0x17   :  { %s61_s24 = sshll.u32 %s2837_s23, 4  ;;  %s83_s26 = sshll.u32 %s2838_s25, 4  ;;  %s62_s24 = int_to_ptr.vmem [resolvable:$true] %s61_s24  ;;  %s84_s26 = int_to_ptr.vmem [resolvable:$true] %s83_s26 }
  0x18   :  { %s2624_s29 = scalar_lea.hbm %s3261_s3, 8192 }
  0x19   :  { %p2625_p8 = scmp.ne.s32.totalorder %s3261_s3, %s2624_s29  ;;  %p2628_p9 = scmp.lt.u32.totalorder %s2624_s29, %s3261_s3 }
  0x1b   :  { %p2630_p10 = pnand %p2628_p9, %p2625_p8 }
  0x1d   :  { %2633 = shalt.err (!%p2630_p10)
}
  0x1e   :  { %s2634_s1 = scalar_lea.vmem %s62_s24, 8192  ;;  %p2639_p12 = scmp.lt.s32.totalorder %s62_s24, %s62_s24 }
  0x1f   :  { %p2635_p11 = scmp.ne.s32.totalorder %s62_s24, %s2634_s1  ;;  %p2640_p13 = scmp.lt.s32.totalorder %s2634_s1, %s2634_s1 }
  0x21   :  { %p2641_p0 = por %p2640_p13, %p2639_p12 }
  0x23   :  { %p2642_p1 = pnand %p2641_p0, %p2635_p11 }
  0x25   :  { %2645 = shalt.err (!%p2642_p1)
}
  0x26   :  { %s2839_s10 = smov 128   ;;  %s2840_s14 = smov 8  }
  0x27   :  { %67 = dma.hbm_to_vmem [thread:$0]  %s3261_s3, 8192, %s62_s24, [#allocation10], %s2839_s10, %s2839_s10, %s2840_s14  }
  0x28   :  { %s2646_s19 = scalar_lea.hbm %s3263_s5, 1920 }
  0x29   :  { %p2647_p2 = scmp.ne.s32.totalorder %s3263_s5, %s2646_s19  ;;  %p2650_p3 = scmp.lt.u32.totalorder %s2646_s19, %s3263_s5 }
  0x2b   :  { %p2652_p4 = pnand %p2650_p3, %p2647_p2 }
  0x2d   :  { %2655 = shalt.err (!%p2652_p4)
}
  0x2e   :  { %s2656_s25 = scalar_lea.vmem %s84_s26, 1920  ;;  %p2661_p6 = scmp.lt.s32.totalorder %s84_s26, %s84_s26 }
  0x2f   :  { %p2657_p5 = scmp.ne.s32.totalorder %s84_s26, %s2656_s25  ;;  %p2662_p7 = scmp.lt.s32.totalorder %s2656_s25, %s2656_s25 }
  0x31   :  { %p2663_p8 = por %p2662_p7, %p2661_p6 }
  0x33   :  { %p2664_p9 = pnand %p2663_p8, %p2657_p5 }
  0x35   :  { %2667 = shalt.err (!%p2664_p9)
}
  0x36   :  { %89 = dma.hbm_to_vmem [thread:$0]  %s3263_s5, 1920, %s84_s26, [#allocation13], %s2839_s10, %s2839_s10, %s2840_s14  }
  0x37   :  { %s2841_s27 = smov [#allocation15]   ;;  %s2842_s29 = smov [#allocation3]  }
  0x38   :  { %s105_s28 = sshll.u32 %s2841_s27, 4  ;;  %s25_s30 = sshll.u32 %s2842_s29, 4  ;;  %s106_s28 = int_to_ptr.vmem [resolvable:$true] %s105_s28  ;;  %s26_s30 = int_to_ptr.vmem [resolvable:$true] %s25_s30 }
  0x39   :  { %s2668_s13 = scalar_lea.hbm %s3265_s7, 1408 }
  0x3a   :  { %p2669_p10 = scmp.ne.s32.totalorder %s3265_s7, %s2668_s13  ;;  %p2672_p11 = scmp.lt.u32.totalorder %s2668_s13, %s3265_s7 }
  0x3c   :  { %p2674_p12 = pnand %p2672_p11, %p2669_p10 }
  0x3e   :  { %2677 = shalt.err (!%p2674_p12)
}
  0x3f   :  { %s2678_s5 = scalar_lea.vmem %s106_s28, 1408  ;;  %p2683_p0 = scmp.lt.s32.totalorder %s106_s28, %s106_s28 }
  0x40   :  { %p2679_p13 = scmp.ne.s32.totalorder %s106_s28, %s2678_s5  ;;  %p2684_p1 = scmp.lt.s32.totalorder %s2678_s5, %s2678_s5 }
  0x42   :  { %p2685_p2 = por %p2684_p1, %p2683_p0 }
  0x44   :  { %p2686_p3 = pnand %p2685_p2, %p2679_p13 }
  0x46   :  { %2689 = shalt.err (!%p2686_p3)
}
  0x47   :  { %111 = dma.hbm_to_vmem [thread:$0]  %s3265_s7, 1408, %s106_s28, [#allocation16], %s2839_s10, %s2839_s10, %s2840_s14  }
  0x48   :  { %s2690_s21 = scalar_lea.hbm %s3258_s0, 4864 }
  0x49   :  { %p2691_p4 = scmp.ne.s32.totalorder %s3258_s0, %s2690_s21  ;;  %p2694_p5 = scmp.lt.u32.totalorder %s2690_s21, %s3258_s0 }
  0x4b   :  { %p2696_p6 = pnand %p2694_p5, %p2691_p4 }
  0x4d   :  { %2699 = shalt.err (!%p2696_p6)
}
  0x4e   :  { %s2700_s24 = scalar_lea.vmem %s26_s30, 4864  ;;  %p2705_p8 = scmp.lt.s32.totalorder %s26_s30, %s26_s30 }
  0x4f   :  { %p2701_p7 = scmp.ne.s32.totalorder %s26_s30, %s2700_s24  ;;  %p2706_p9 = scmp.lt.s32.totalorder %s2700_s24, %s2700_s24 }
  0x51   :  { %p2707_p10 = por %p2706_p9, %p2705_p8 }
  0x53   :  { %p2708_p11 = pnand %p2707_p10, %p2701_p7 }
  0x55   :  { %2711 = shalt.err (!%p2708_p11)
}
  0x56   :  { %31 = dma.hbm_to_vmem [thread:$0]  %s3258_s0, 4864, %s26_s30, [#allocation4], %s2839_s10, %s2839_s10, %s2840_s14  }
  0x57   :  { %s2843_s28 = smov [#allocation8]   ;;  %s2844_s11 = smov [#allocation11]  }
  0x58   :  { %s49_s29 = sshll.u32 %s2843_s28, 4  ;;  %s74_s12 = sshll.u32 %s2844_s11, 4  ;;  %s50_s29 = int_to_ptr.vmem [resolvable:$true] %s49_s29  ;;  %s75_s12 = int_to_ptr.vmem [resolvable:$true] %s74_s12 }
  0x59   :  { %s2712_s15 = scalar_lea.hbm %s3260_s2, 256 }
  0x5a   :  { %p2713_p12 = scmp.ne.s32.totalorder %s3260_s2, %s2712_s15  ;;  %p2716_p13 = scmp.lt.u32.totalorder %s2712_s15, %s3260_s2 }
  0x5c   :  { %p2718_p0 = pnand %p2716_p13, %p2713_p12 }
  0x5e   :  { %2721 = shalt.err (!%p2718_p0)
}
  0x5f   :  { %s2722_s0 = scalar_lea.vmem %s50_s29, 256  ;;  %p2727_p2 = scmp.lt.s32.totalorder %s50_s29, %s50_s29 }
  0x60   :  { %p2723_p1 = scmp.ne.s32.totalorder %s50_s29, %s2722_s0  ;;  %p2728_p3 = scmp.lt.s32.totalorder %s2722_s0, %s2722_s0 }
  0x62   :  { %p2729_p4 = por %p2728_p3, %p2727_p2 }
  0x64   :  { %p2730_p5 = pnand %p2729_p4, %p2723_p1 }
  0x66   :  { %2733 = shalt.err (!%p2730_p5)
}
  0x67   :  { %55 = dma.hbm_to_vmem [thread:$0]  %s3260_s2, 256, %s50_s29, [#allocation7], %s2839_s10, %s2839_s10, %s2840_s14  }
  0x68   :  { %s2734_s21 = scalar_lea.hbm %s3262_s4, 16 }
  0x69   :  { %p2735_p6 = scmp.ne.s32.totalorder %s3262_s4, %s2734_s21  ;;  %p2738_p7 = scmp.lt.u32.totalorder %s2734_s21, %s3262_s4 }
  0x6b   :  { %p2740_p8 = pnand %p2738_p7, %p2735_p6 }
  0x6d   :  { %2743 = shalt.err (!%p2740_p8)
}
  0x6e   :  { %s2744_s24 = scalar_lea.vmem %s75_s12, 16  ;;  %s2748_s7 = scalar_lea.vmem %s75_s12, 32 }
  0x6f   :  { %p2745_p9 = scmp.ne.s32.totalorder %s75_s12, %s2744_s24  ;;  %p2749_p10 = scmp.lt.s32.totalorder %s75_s12, %s75_s12 }
  0x70   :  { %p2750_p11 = scmp.lt.s32.totalorder %s2748_s7, %s2744_s24 }
  0x72   :  { %p2751_p12 = por %p2750_p11, %p2749_p10 }
  0x74   :  { %p2752_p13 = pnand %p2751_p12, %p2745_p9 }
  0x76   :  { %2755 = shalt.err (!%p2752_p13)
}
  0x77   :  { %77 = dma.hbm_to_vmem [thread:$0]  %s3262_s4, 16, %s75_s12, [#allocation10]  }
  0x78   :  { %s2845_s14 = smov [#allocation14]   ;;  %s2846_s28 = smov [#allocation17]  }
  0x79   :  { %s96_s27 = sshll.u32 %s2845_s14, 4  ;;  %s118_s29 = sshll.u32 %s2846_s28, 4  ;;  %s97_s27 = int_to_ptr.vmem [resolvable:$true] %s96_s27  ;;  %s119_s29 = int_to_ptr.vmem [resolvable:$true] %s118_s29 }
  0x7a   :  { %s2756_s1 = scalar_lea.hbm %s3264_s6, 16 }
  0x7b   :  { %p2757_p0 = scmp.ne.s32.totalorder %s3264_s6, %s2756_s1  ;;  %p2760_p1 = scmp.lt.u32.totalorder %s2756_s1, %s3264_s6 }
  0x7d   :  { %p2762_p2 = pnand %p2760_p1, %p2757_p0 }
  0x7f   :  { %2765 = shalt.err (!%p2762_p2)
}
  0x80   :  { %s2766_s4 = scalar_lea.vmem %s97_s27, 16  ;;  %s2770_s12 = scalar_lea.vmem %s97_s27, 32 }
  0x81   :  { %p2767_p3 = scmp.ne.s32.totalorder %s97_s27, %s2766_s4  ;;  %p2771_p4 = scmp.lt.s32.totalorder %s97_s27, %s97_s27 }
  0x82   :  { %p2772_p5 = scmp.lt.s32.totalorder %s2770_s12, %s2766_s4 }
  0x84   :  { %p2773_p6 = por %p2772_p5, %p2771_p4 }
  0x86   :  { %p2774_p7 = pnand %p2773_p6, %p2767_p3 }
  0x88   :  { %2777 = shalt.err (!%p2774_p7)
}
  0x89   :  { %99 = dma.hbm_to_vmem [thread:$0]  %s3264_s6, 16, %s97_s27, [#allocation13]  }
  0x8a   :  { %s2778_s19 = scalar_lea.hbm %s3266_s8, 16 }
  0x8b   :  { %p2779_p8 = scmp.ne.s32.totalorder %s3266_s8, %s2778_s19  ;;  %p2782_p9 = scmp.lt.u32.totalorder %s2778_s19, %s3266_s8 }
  0x8d   :  { %p2784_p10 = pnand %p2782_p9, %p2779_p8 }
  0x8f   :  { %2787 = shalt.err (!%p2784_p10)
}
  0x90   :  { %s2788_s25 = scalar_lea.vmem %s119_s29, 16  ;;  %s2792_s3 = scalar_lea.vmem %s119_s29, 32 }
  0x91   :  { %p2789_p11 = scmp.ne.s32.totalorder %s119_s29, %s2788_s25  ;;  %p2793_p12 = scmp.lt.s32.totalorder %s119_s29, %s119_s29 }
  0x92   :  { %p2794_p13 = scmp.lt.s32.totalorder %s2792_s3, %s2788_s25 }
  0x94   :  { %p2795_p0 = por %p2794_p13, %p2793_p12 }
  0x96   :  { %p2796_p1 = pnand %p2795_p0, %p2789_p11 }
  0x98   :  { %2799 = shalt.err (!%p2796_p1)
}
  0x99   :  { %121 = dma.hbm_to_vmem [thread:$0]  %s3266_s8, 16, %s119_s29, [#allocation16]  }
  0x9a   :  { %2822 = dma.done.wait [#allocation4], 4864  }
  0x9b   :  { %2823 = vsyncadd [#allocation4], 4294962432 }
  0x9c   :  { %2824 = dma.done.wait [#allocation7], 768  }
  0x9d   :  { %2825 = vsyncadd [#allocation7], 4294966528 }
  0x9e   :  { %2826 = dma.done.wait [#allocation10], 8208  }
  0x9f   :  { %2827 = vsyncadd [#allocation10], 4294959088 }
  0xa0   :  { %2828 = dma.done.wait [#allocation13], 1936  }
  0xa1   :  { %2829 = vsyncadd [#allocation13], 4294965360 }
  0xa2   :  { %2830 = dma.done.wait [#allocation16], 1424  }
  0xa3   :  { %2831 = vsyncadd [#allocation16], 4294965872  ;;  %v2847_v0 = vmov 0.0|0.0   ;;  %v155_v1 = vld [vmem:[#allocation3] sm:$0xff]  ;;  %v156_v2 = vld [vmem:[#allocation3 + $0x8] sm:$0xff]  ;;  %vm174_vm0 = vcmask 179200  }
  0xa4   :  { %2378 = vmatprep.subr.bf16.mxu0 %v2847_v0  ;;  %2405 = vmatprep.subr.bf16.mxu1 %v2847_v0  ;;  %v298_v3 = vld [vmem:[#allocation3 + $0x98] sm:$0xff]  ;;  %v2379_v4 = vpack.c.bf16 %v156_v2, %v155_v1  ;;  %v299_v5 = vld [vmem:[#allocation3 + $0xa0] sm:$0xff]  ;;  %v157_v6 = vld [vmem:[#allocation3 + $0x10] sm:$0xff]  ;;  %v2848_v56 = vmov 0.0   ;;  %vm181_vm1 = vcmask 1045504   ;;  %v2849_v62 = vmov 0  }
  0xa5   :  { %v158_v7 = vld [vmem:[#allocation3 + $0x18] sm:$0xff]  ;;  %v2406_v8 = vpack.c.bf16 %v299_v5, %v298_v3  ;;  %v300_v9 = vld [vmem:[#allocation3 + $0xa8] sm:$0xff]  ;;  %v301_v10 = vld [vmem:[#allocation3 + $0xb0] sm:$0xff]  ;;  %2601 = vset.pattern.permute.xlu0 %v2849_v62  ;;  %s2850_s8 = smov 103   ;;  %s2851_s7 = smov 78   ;;  %vm442_vm2 = vcmask 1040384  }
  0xa6   :  { %2380 = vmatpush1.bf16.msra.mxu0 %v2379_v4  ;;  %v2382_v11 = vpack.c.bf16 %v158_v7, %v157_v6  ;;  %v2409_v12 = vpack.c.bf16 %v301_v10, %v300_v9  ;;  %v159_v13 = vld [vmem:[#allocation3 + $0x20] sm:$0xff]  ;;  %v160_v14 = vld [vmem:[#allocation3 + $0x28] sm:$0xff]  ;;  %v302_v15 = vld [vmem:[#allocation3 + $0xb8] sm:$0xff]  ;;  %vm2852_vm3 = vmmov 1   ;;  %vm2853_vm5 = vmmov 0   ;;  %s2854_s2 = smov [#allocation18]  }
  0xa7   :  { %2407 = vmatpush1.bf16.msra.mxu1 %v2406_v8  ;;  %2381 = vmatprep.subr.bf16.mxu0 %v2847_v0  ;;  %v303_v16 = vld [vmem:[#allocation3 + $0xc0] sm:$0xff]  ;;  %v2385_v17 = vpack.c.bf16 %v160_v14, %v159_v13  ;;  %v161_v19 = vld [vmem:[#allocation3 + $0x30] sm:$0xff]  ;;  %v162_v20 = vld [vmem:[#allocation3 + $0x38] sm:$0xff]  ;;  %vm294_vm6 = vcmask 203776   ;;  %vm438_vm7 = vcmask 1041409   ;;  %vm1800_vm8 = vcmask 982016  }
  0xa8   :  { %2408 = vmatprep.subr.bf16.mxu1 %v2847_v0  ;;  %v2412_v18 = vpack.c.bf16 %v303_v16, %v302_v15  ;;  %v304_v21 = vld [vmem:[#allocation3 + $0xc8] sm:$0xff]  ;;  %v305_v22 = vld [vmem:[#allocation3 + $0xd0] sm:$0xff]  ;;  %v2388_v23 = vpack.c.bf16 %v162_v20, %v161_v19  ;;  %v163_v25 = vld [vmem:[#allocation3 + $0x40] sm:$0xff]  ;;  %vm1897_vm9 = vcmask 1043456   ;;  %vm1893_vm10 = vcmask 687104   ;;  %s1979_s10 = sshll.u32 %s2854_s2, 4  ;;  %s1980_s10 = int_to_ptr.vmem [resolvable:$true] %s1979_s10 }
  0xa9   :  { %v2415_v24 = vpack.c.bf16 %v305_v22, %v304_v21  ;;  %v164_v26 = vld [vmem:[#allocation3 + $0x48] sm:$0xff]  ;;  %v150_v27 = vld [vmem:[#allocation6 + $0x8] sm:$0xff]  ;;  %v307_v29 = vld [vmem:[#allocation3 + $0xe0] sm:$0xff]  ;;  %vm1971_vm11 = vcmask 74752   ;;  %s2800_s14 = scalar_lea.vmem %s1980_s10, 32  ;;  %p2805_p3 = scmp.lt.s32.totalorder %s1980_s10, %s1980_s10 }
  0xaa   :  { %2383 = vmatpush1.bf16.msra.mxu0 %v2382_v11  ;;  %v306_v28 = vld [vmem:[#allocation3 + $0xd8] sm:$0xff]  ;;  %1993 = vmatprep.mubr.msk.f32.mxu0 %vm174_vm0, %v150_v27  ;;  %v2391_v30 = vpack.c.bf16 %v164_v26, %v163_v25  ;;  %v165_v32 = vld [vmem:[#allocation3 + $0x50] sm:$0xff]  ;;  %v308_v34 = vld [vmem:[#allocation3 + $0xe8] sm:$0xff]  ;;  %p2801_p2 = scmp.ne.s32.totalorder %s1980_s10, %s2800_s14  ;;  %p2806_p4 = scmp.lt.s32.totalorder %s2800_s14, %s2800_s14 }
  0xab   :  { %2410 = vmatpush1.bf16.msra.mxu1 %v2409_v12  ;;  %2384 = vmatprep.subr.bf16.mxu0 %v2847_v0  ;;  %v2418_v31 = vpack.c.bf16 %v307_v29, %v306_v28  ;;  %v166_v33 = vld [vmem:[#allocation3 + $0x58] sm:$0xff]  ;;  %v309_v35 = vld [vmem:[#allocation3 + $0xf0] sm:$0xff]  ;;  %v167_v38 = vld [vmem:[#allocation3 + $0x60] sm:$0xff] }
  0xac   :  { %2411 = vmatprep.subr.bf16.mxu1 %v2847_v0  ;;  %1996 = vmatprep.mubr.msk.f32.mxu1 %vm174_vm0, %v150_v27  ;;  %v2394_v36 = vpack.c.bf16 %v166_v33, %v165_v32  ;;  %v2421_v37 = vpack.c.bf16 %v309_v35, %v308_v34  ;;  %v168_v39 = vld [vmem:[#allocation3 + $0x68] sm:$0xff]  ;;  %v310_v40 = vld [vmem:[#allocation3 + $0xf8] sm:$0xff]  ;;  %v311_v41 = vld [vmem:[#allocation3 + $0x100] sm:$0xff]  ;;  %p2807_p5 = por %p2806_p4, %p2805_p3 }
  0xad   :  { %v2397_v42 = vpack.c.bf16 %v168_v39, %v167_v38  ;;  %v2424_v43 = vpack.c.bf16 %v311_v41, %v310_v40  ;;  %v169_v44 = vld [vmem:[#allocation3 + $0x70] sm:$0xff]  ;;  %v170_v45 = vld [vmem:[#allocation3 + $0x78] sm:$0xff]  ;;  %v312_v46 = vld [vmem:[#allocation3 + $0x108] sm:$0xff] }
  0xae   :  { %2386 = vmatpush1.bf16.msra.mxu0 %v2385_v17  ;;  %v313_v47 = vld [vmem:[#allocation3 + $0x110] sm:$0xff]  ;;  %v2400_v48 = vpack.c.bf16 %v170_v45, %v169_v44  ;;  %v171_v50 = vld [vmem:[#allocation3 + $0x80] sm:$0xff]  ;;  %v172_v51 = vld [vmem:[#allocation3 + $0x88] sm:$0xff]  ;;  %p2808_p6 = pnand %p2807_p5, %p2801_p2 }
  0xaf   :  { %2413 = vmatpush1.bf16.msra.mxu1 %v2412_v18  ;;  %2387 = vmatprep.subr.bf16.mxu0 %v2847_v0  ;;  %v2427_v49 = vpack.c.bf16 %v313_v47, %v312_v46  ;;  %v314_v52 = vld [vmem:[#allocation3 + $0x118] sm:$0xff]  ;;  %v315_v53 = vld [vmem:[#allocation3 + $0x120] sm:$0xff]  ;;  %v2403_v54 = vpack.c.bf16 %v172_v51, %v171_v50  ;;  %v173_v57 = vld [vmem:[#allocation3 + $0x90] sm:$0x3f] }
  0xb0   :  { %2414 = vmatprep.subr.bf16.mxu1 %v2847_v0  ;;  %v2430_v55 = vpack.c.bf16 %v315_v53, %v314_v52  ;;  %v316_v58 = vld [vmem:[#allocation3 + $0x128] sm:$0x3f]  ;;  %v149_v59 = vld [vmem:[#allocation6] sm:$0xff]  ;;  %v151_v61 = vld [vmem:[#allocation6 + $0x10] sm:$0xff] }
  0xb1   :  { %v152_v60 = vld [vmem:[#allocation6 + $0x18] sm:$0xff]  ;;  %v153_v8 = vld [vmem:[#allocation8] sm:$0xff]  ;;  %v154_v9 = vld [vmem:[#allocation8 + $0x8] sm:$0xff] }
  0xb2   :  { %2389 = vmatpush1.bf16.msra.mxu0 %v2388_v23  ;;  %v431_v10 = vld [vmem:[#allocation9 + $0x20] sm:$0xff]  ;;  %v432_v11 = vld [vmem:[#allocation9 + $0x28] sm:$0xff]  ;;  %v433_v18 = vld [vmem:[#allocation9 + $0x30] sm:$0xff] }
  0xb3   :  { %2416 = vmatpush1.bf16.msra.mxu1 %v2415_v24  ;;  %2390 = vmatprep.subr.bf16.mxu0 %v2847_v0  ;;  %v2433_v13 = vpack.c.bf16 %v432_v11, %v431_v10  ;;  %v426_v15 = vld [vmem:[#allocation9] sm:$0xff]  ;;  %v427_v16 = vld [vmem:[#allocation9 + $0x8] sm:$0xff]  ;;  %v434_v19 = vld [vmem:[#allocation9 + $0x38] sm:$0x1] }
  0xb4   :  { %2417 = vmatprep.subr.bf16.mxu1 %v2847_v0  ;;  %v2440_v17 = vpack.c.bf16 %v427_v16, %v426_v15  ;;  %v2436_v21 = vpack.c.bf16 %v434_v19, %v433_v18  ;;  %vm3055_vm4 = vmpackc.low %vm442_vm2, %vm2852_vm3  ;;  %v428_v25 = vld [vmem:[#allocation9 + $0x10] sm:$0xff]  ;;  %v429_v26 = vld [vmem:[#allocation9 + $0x18] sm:$0x1] }
  0xb5   :  { %v2443_v27 = vpack.c.bf16 %v429_v26, %v428_v25  ;;  %v594_v50 = vld [vmem:[#allocation9 + $0x40] sm:$0xff]  ;;  %v595_v51 = vld [vmem:[#allocation9 + $0x48] sm:$0xff]  ;;  %v848_v18 = vld [vmem:[#allocation9 + $0xb0] sm:$0xff] }
  0xb6   :  { %2392 = vmatpush1.bf16.msra.mxu0 %v2391_v30  ;;  %v678_v52 = vld [vmem:[#allocation9 + $0x60] sm:$0xff]  ;;  %v679_v53 = vld [vmem:[#allocation9 + $0x68] sm:$0xff]  ;;  %v849_v19 = vld [vmem:[#allocation9 + $0xb8] sm:$0x1] }
  0xb7   :  { %2419 = vmatpush1.bf16.msra.mxu1 %v2418_v31  ;;  %2393 = vmatprep.subr.bf16.mxu0 %v2847_v0  ;;  %v2454_v62 = vpack.c.bf16 %v679_v53, %v678_v52  ;;  %v2471_v25 = vpack.c.bf16 %v849_v19, %v848_v18  ;;  %v1101_v52 = vld [vmem:[#allocation9 + $0x118] sm:$0x1] }
  0xb8   :  { %2420 = vmatprep.subr.bf16.mxu1 %v2847_v0 }
  0xba   :  { %2395 = vmatpush1.bf16.msra.mxu0 %v2394_v36 }
  0xbb   :  { %2422 = vmatpush1.bf16.msra.mxu1 %v2421_v37  ;;  %2396 = vmatprep.subr.bf16.mxu0 %v2847_v0 }
  0xbc   :  { %2423 = vmatprep.subr.bf16.mxu1 %v2847_v0 }
  0xbe   :  { %2398 = vmatpush1.bf16.msra.mxu0 %v2397_v42 }
  0xbf   :  { %2425 = vmatpush1.bf16.msra.mxu1 %v2424_v43  ;;  %2399 = vmatprep.subr.bf16.mxu0 %v2847_v0 }
  0xc0   :  { %2426 = vmatprep.subr.bf16.mxu1 %v2847_v0 }
  0xc2   :  { %2401 = vmatpush1.bf16.msra.mxu0 %v2400_v48 }
  0xc3   :  { %2428 = vmatpush1.bf16.msra.mxu1 %v2427_v49  ;;  %2402 = vmatprep.subr.bf16.mxu0 %v2847_v0 }
  0xc4   :  { %2429 = vmatprep.subr.bf16.mxu1 %v2847_v0 }
  0xc6   :  { %2404 = vmatpush1.bf16.msra.mxu0 %v2403_v54 }
  0xc7   :  { %2431 = vmatpush1.bf16.msra.mxu1 %v2430_v55  ;;  %221 = vmatprep.subr.mxu0 %v2848_v56  ;;  %v2447_v55 = vpack.c.bf16 %v595_v51, %v594_v50  ;;  %v1100_v51 = vld [vmem:[#allocation9 + $0x110] sm:$0xff] }
  0xc8   :  { %356 = vmatprep.subr.mxu1 %v2848_v56 }
  0xca   :  { %1992 = vmatpush1.msk.msra.mxu0 %vm181_vm1, %v173_v57 }
  0xcb   :  { %1995 = vmatpush1.msk.msra.mxu1 %vm181_vm1, %v316_v58  ;;  %250 = vmatmul.mubr.f32.vlgmr.msra.gmra.mrb[0].mxu0 %v149_v59  ;;  %v596_v58 = vld [vmem:[#allocation9 + $0x50] sm:$0xff] }
  0xcc   :  { %385 = vmatmul.mubr.f32.vlgmr.msra.gmra.mrb[0].mxu1 %v149_v59  ;;  %1994 = vmatprep.mubr.msk.f32.mxu0 %vm174_vm0, %v152_v60  ;;  %v597_v59 = vld [vmem:[#allocation9 + $0x58] sm:$0x1] }
  0xcd   :  { %1997 = vmatprep.mubr.msk.f32.mxu1 %vm174_vm0, %v152_v60  ;;  %2432 = vmatprep.subr.bf16.mxu0 %v2847_v0 }
  0xce   :  { %2439 = vmatprep.subr.bf16.mxu1 %v2847_v0  ;;  %2434 = vmatpush3.bf16.msra.mxu0 %v2433_v13  ;;  %v764_v13 = vld [vmem:[#allocation9 + $0x90] sm:$0xff] }
  0xcf   :  { %255 = vmatmul.mubr.f32.gmra.mrb[2].mxu0 %v151_v61  ;;  %2435 = vmatprep.subr.bf16.mxu0 %v2847_v0 }
  0xd0   :  { %390 = vmatmul.mubr.f32.gmra.mrb[2].mxu1 %v151_v61  ;;  %2152 = vmatprep.mubr.msk.f32.mxu0 %vm2853_vm5, %v2848_v56 }
  0xd1   :  { %2441 = vmatpush3.bf16.msra.mxu1 %v2440_v17  ;;  %2163 = vmatprep.mubr.msk.f32.mxu1 %vm2853_vm5, %v2848_v56 }
  0xd2   :  { %2442 = vmatprep.subr.bf16.mxu1 %v2847_v0  ;;  %2438 = vmatpush3.bf16.msk.msra.mxu0 %vm3055_vm4, %v2436_v21 }
  0xd3   :  { %2446 = vmatprep.subr.bf16.mxu0 %v2847_v0 }
  0xd5   :  { %2445 = vmatpush3.bf16.msk.msra.mxu1 %vm3055_vm4, %v2443_v27  ;;  %v1014_v27 = vld [vmem:[#allocation9 + $0xe0] sm:$0xff] }
  0xd6   :  { %2453 = vmatprep.subr.bf16.mxu1 %v2847_v0 }
 0x19e   :  { %v251_v63 = vpop.f32.mrb[0].mxu0 }
 0x19f   :  { %262 = vrot.lane.b32.xlu0 %v251_v63, %s2850_s8  ;;  %v253_v1 = vpop.f32.mrb[1].mxu0  ;;  %v386_v2 = vpop.f32.mrb[0].mxu1 }
 0x1a0   :  { %v388_v3 = vpop.f32.mrb[1].mxu1  ;;  %v681_v1 = vld [vmem:[#allocation9 + $0x78] sm:$0x1] }
 0x1a1   :  { %v2450_v3 = vpack.c.bf16 %v597_v59, %v596_v58  ;;  %v1185_v58 = vld [vmem:[#allocation9 + $0x130] sm:$0xff]  ;;  %v1186_v59 = vld [vmem:[#allocation9 + $0x138] sm:$0x1] }
 0x1a2   :  { %v256_v4 = vpop.f32.mrb[2].mxu0 }
 0x1a3   :  { %v391_v5 = vpop.f32.mrb[2].mxu1  ;;  %397 = vrot.lane.b32.xlu0 %v386_v2, %s2850_s8  ;;  %v258_v6 = vpop.f32.mrb[3].mxu0 }
 0x1a4   :  { %399 = vrot.lane.b32.xlu1 %v391_v5, %s2850_s8  ;;  %v393_v7 = vpop.f32.mrb[3].mxu1 }
 0x1a7   :  { %282 = vperm.xlu0 %2601, %v153_v8   ;;  %v846_v8 = vld [vmem:[#allocation9 + $0xa0] sm:$0xff] }
 0x1a8   :  { %264 = vrot.lane.b32.xlu1 %v256_v4, %s2850_s8 }
 0x1ab   :  { %287 = vperm.xlu0 %2601, %v154_v9   ;;  %v847_v9 = vld [vmem:[#allocation9 + $0xa8] sm:$0xff] }
 0x1ac   :  { %v2468_v17 = vpack.c.bf16 %v847_v9, %v846_v8  ;;  %v1269_v8 = vld [vmem:[#allocation9 + $0x158] sm:$0x1] }
 0x211   :  { %v263_v12 = vpop.permute.xlu0 %262 }
 0x212   :  { %v268_v14 = vmax.f32 %v251_v63, %v263_v12  ;;  %v680_v63 = vld [vmem:[#allocation9 + $0x70] sm:$0xff] }
 0x213   :  { %v2457_v6 = vpack.c.bf16 %v681_v1, %v680_v63  ;;  %v1267_v63 = vld [vmem:[#allocation9 + $0x148] sm:$0xff]  ;;  %v2499_v1 = vpack.c.bf16 %v1186_v59, %v1185_v58 }
 0x214   :  { %272 = vrot.lane.b32.xlu1 %v268_v14, %s2851_s7 }
 0x215   :  { %v398_v20 = vpop.permute.xlu0 %397 }
 0x216   :  { %v400_v22 = vpop.permute.xlu1 %399  ;;  %v403_v23 = vmax.f32 %v386_v2, %v398_v20 }
 0x217   :  { %v404_v28 = vmax.f32 %v391_v5, %v400_v22  ;;  %v763_v5 = vld [vmem:[#allocation9 + $0x88] sm:$0xff]  ;;  %v930_v22 = vld [vmem:[#allocation9 + $0xc0] sm:$0xff] }
 0x218   :  { %407 = vrot.lane.b32.xlu1 %v403_v23, %s2851_s7 }
 0x21a   :  { %v265_v29 = vpop.permute.xlu1 %264 }
 0x21b   :  { %v269_v30 = vmax.f32 %v256_v4, %v265_v29  ;;  %v762_v4 = vld [vmem:[#allocation9 + $0x80] sm:$0xff] }
 0x21c   :  { %409 = vrot.lane.b32.xlu1 %v404_v28, %s2851_s7  ;;  %v2461_v11 = vpack.c.bf16 %v763_v5, %v762_v4  ;;  %v1351_v4 = vld [vmem:[#allocation9 + $0x168] sm:$0xff] }
 0x21d   :  { %274 = vrot.lane.b32.xlu0 %v269_v30, %s2851_s7 }
 0x226   :  { %v283_v31 = vpop.permute.xlu0 %282 }
 0x22a   :  { %v288_v35 = vpop.permute.xlu0 %287 }
 0x286   :  { %v273_v32 = vpop.permute.xlu1 %272 }
 0x287   :  { %v278_v33 = vmax.f32 %v268_v14, %v273_v32  ;;  %v765_v14 = vld [vmem:[#allocation9 + $0x98] sm:$0x1]  ;;  %v932_v32 = vld [vmem:[#allocation9 + $0xd0] sm:$0xff] }
 0x288   :  { %v2464_v21 = vpack.c.bf16 %v765_v14, %v764_v13 }
 0x289   :  { %v290_v34 = vadd.f32 %v283_v31, %v278_v33  ;;  %v933_v33 = vld [vmem:[#allocation9 + $0xd8] sm:$0x1] }
 0x28a   :  { %v408_v36 = vpop.permute.xlu1 %407 }
 0x28b   :  { %v292_v37 = vmax.f32 %v290_v34, 0.0  ;;  %v413_v38 = vmax.f32 %v403_v23, %v408_v36  ;;  %v931_v23 = vld [vmem:[#allocation9 + $0xc8] sm:$0xff] }
 0x28d   :  { %295 = vst.msk [vmem:[#allocation2] sm:$0xff] %vm294_vm6, %v292_v37  ;;  %v415_v39 = vadd.f32 %v413_v38, %v283_v31  ;;  %v1016_v37 = vld [vmem:[#allocation9 + $0xf0] sm:$0xff]  ;;  %v1017_v38 = vld [vmem:[#allocation9 + $0xf8] sm:$0x1] }
 0x28e   :  { %v410_v40 = vpop.permute.xlu1 %409 }
 0x28f   :  { %v417_v41 = vmax.f32 %v415_v39, 0.0  ;;  %v275_v42 = vpop.permute.xlu0 %274  ;;  %v414_v43 = vmax.f32 %v404_v28, %v410_v40  ;;  %v1015_v28 = vld [vmem:[#allocation9 + $0xe8] sm:$0xff]  ;;  %v2478_v40 = vpack.c.bf16 %v933_v33, %v932_v32 }
 0x290   :  { %v279_v44 = vmax.f32 %v269_v30, %v275_v42  ;;  %v2475_v30 = vpack.c.bf16 %v931_v23, %v930_v22  ;;  %v2482_v36 = vpack.c.bf16 %v1015_v28, %v1014_v27  ;;  %v1099_v42 = vld [vmem:[#allocation9 + $0x108] sm:$0xff]  ;;  %v1437_v27 = vld [vmem:[#allocation9 + $0x198] sm:$0x1] }
 0x291   :  { %420 = vst.msk [vmem:[#allocation2 + $0x10] sm:$0xff] %vm294_vm6, %v417_v41  ;;  %v416_v45 = vadd.f32 %v414_v43, %v288_v35  ;;  %v1098_v41 = vld [vmem:[#allocation9 + $0x100] sm:$0xff]  ;;  %v2485_v43 = vpack.c.bf16 %v1017_v38, %v1016_v37 }
 0x292   :  { %v291_v46 = vadd.f32 %v288_v35, %v279_v44 }
 0x293   :  { %v418_v47 = vmax.f32 %v416_v45, 0.0  ;;  %v1183_v45 = vld [vmem:[#allocation9 + $0x120] sm:$0xff] }
 0x294   :  { %v293_v48 = vmax.f32 %v291_v46, 0.0  ;;  %v3072_v49 = vld [vmem:[#allocation2] sm:$0xff]  ;;  %v1184_v46 = vld [vmem:[#allocation9 + $0x128] sm:$0xff] }
 0x295   :  { %421 = vst.msk [vmem:[#allocation2 + $0x18] sm:$0xff] %vm294_vm6, %v418_v47  ;;  %v437_v54 = vrot.slane %v3072_v49, 1  ;;  %v598_v10 = vrot.slane %v3072_v49, 2  ;;  %v682_v16 = vrot.slane %v3072_v49, 3  ;;  %v766_v29 = vrot.slane %v3072_v49, 4 }
 0x296   :  { %296 = vst.msk [vmem:[#allocation2 + $0x8] sm:$0xff] %vm294_vm6, %v293_v48  ;;  %v850_v35 = vrot.slane %v3072_v49, 5  ;;  %v934_v47 = vrot.slane %v3072_v49, 6  ;;  %v2489_v48 = vpack.c.bf16 %v1099_v42, %v1098_v41 }
 0x298   :  { %v3077_v57 = vld [vmem:[#allocation2 + $0x10] sm:$0xff] }
 0x299   :  { %v439_v60 = vsel %vm438_vm7, %v3077_v57, %v437_v54  ;;  %v516_v61 = vrot.slane %v3077_v57, 7  ;;  %v599_v7 = vrot.slane %v3077_v57, 1  ;;  %v683_v12 = vrot.slane %v3077_v57, 2 }
 0x29a   :  { %2153 = vmatmul.mubr.msk.f32.vlgmr.msra.gmra.mrb[4].mxu0 %vm294_vm6, %v439_v60  ;;  %v767_v26 = vrot.slane %v3077_v57, 3  ;;  %v851_v31 = vrot.slane %v3077_v57, 4  ;;  %v935_v44 = vrot.slane %v3077_v57, 5  ;;  %v1019_v50 = vrot.slane %v3077_v57, 6 }
 0x29b   :  { %2448 = vmatpush3.bf16.msra.mxu0 %v2447_v55  ;;  %v517_v2 = vsel %vm438_vm7, %v516_v61, %v3072_v49  ;;  %2174 = vmatprep.mubr.msk.f32.mxu0 %vm2853_vm5, %v2848_v56  ;;  %v600_v15 = vsel %vm438_vm7, %v599_v7, %v598_v10  ;;  %v684_v20 = vsel %vm438_vm7, %v683_v12, %v682_v16  ;;  %v1018_v54 = vrot.slane %v3072_v49, 7  ;;  %v1268_v7 = vld [vmem:[#allocation9 + $0x150] sm:$0xff]  ;;  %v1353_v12 = vld [vmem:[#allocation9 + $0x178] sm:$0x1]  ;;  %v1435_v16 = vld [vmem:[#allocation9 + $0x188] sm:$0xff] }
 0x29c   :  { %2164 = vmatmul.mubr.msk.f32.vlgmr.msra.gmra.mrb[4].mxu1 %vm294_vm6, %v517_v2  ;;  %2449 = vmatprep.subr.bf16.mxu0 %v2847_v0  ;;  %v768_v34 = vsel %vm438_vm7, %v767_v26, %v766_v29  ;;  %v852_v39 = vsel %vm438_vm7, %v851_v31, %v850_v35  ;;  %v936_v53 = vsel %vm438_vm7, %v935_v44, %v934_v47  ;;  %v3144_v60 = vld [vmem:[#allocation2 + $0x18] sm:$0xff]  ;;  %v1436_v26 = vld [vmem:[#allocation9 + $0x190] sm:$0xff]  ;;  %v1603_v35 = vld [vmem:[#allocation9 + $0x1c8] sm:$0xff] }
 0x29d   :  { %2455 = vmatpush3.bf16.msra.mxu1 %v2454_v62  ;;  %2185 = vmatprep.mubr.msk.f32.mxu1 %vm2853_vm5, %v2848_v56  ;;  %v2496_v55 = vpack.c.bf16 %v1184_v46, %v1183_v45  ;;  %v1020_v57 = vsel %vm438_vm7, %v1019_v50, %v1018_v54  ;;  %v2492_v61 = vpack.c.bf16 %v1101_v52, %v1100_v51  ;;  %v3151_v49 = vld [vmem:[#allocation2 + $0x8] sm:$0xff]  ;;  %v1266_v62 = vld [vmem:[#allocation9 + $0x140] sm:$0xff]  ;;  %v1104_v2 = vrot.slane %v3144_v60, 7  ;;  %v1521_v31 = vld [vmem:[#allocation9 + $0x1b8] sm:$0x1] }
 0x29e   :  { %2456 = vmatprep.subr.bf16.mxu1 %v2847_v0  ;;  %v2503_v5 = vpack.c.bf16 %v1267_v63, %v1266_v62  ;;  %v2506_v14 = vpack.c.bf16 %v1269_v8, %v1268_v7  ;;  %v1270_v18 = vrot.slane %v3151_v49, 2  ;;  %v1271_v19 = vrot.slane %v3144_v60, 1  ;;  %v1604_v44 = vld [vmem:[#allocation9 + $0x1d0] sm:$0xff]  ;;  %v1605_v45 = vld [vmem:[#allocation9 + $0x1d8] sm:$0x1]  ;;  %v1781_v63 = vld [vmem:[#allocation12 + $0x18] sm:$0xff] }
 0x29f   :  { %2452 = vmatpush3.bf16.msk.msra.mxu0 %vm3055_vm4, %v2450_v3  ;;  %v1350_v3 = vld [vmem:[#allocation9 + $0x160] sm:$0xff]  ;;  %v1105_v9 = vsel %vm438_vm7, %v1104_v2, %v3151_v49  ;;  %v1354_v23 = vrot.slane %v3151_v49, 3  ;;  %v2520_v33 = vpack.c.bf16 %v1437_v27, %v1436_v26  ;;  %v1438_v37 = vrot.slane %v3151_v49, 4  ;;  %v1689_v50 = vld [vmem:[#allocation9 + $0x1f8] sm:$0x1] }
 0x2a0   :  { %2460 = vmatprep.subr.bf16.mxu0 %v2847_v0  ;;  %v2510_v10 = vpack.c.bf16 %v1351_v4, %v1350_v3  ;;  %v1272_v28 = vsel %vm438_vm7, %v1271_v19, %v1270_v18  ;;  %v1439_v38 = vrot.slane %v3144_v60, 3  ;;  %v1522_v42 = vrot.slane %v3151_v49, 5  ;;  %v1780_v62 = vld [vmem:[#allocation12 + $0x10] sm:$0xff]  ;;  %v1782_v2 = vld [vmem:[#allocation12 + $0x20] sm:$0xff]  ;;  %v1783_v3 = vld [vmem:[#allocation12 + $0x28] sm:$0xff] }
 0x2a1   :  { %2459 = vmatpush3.bf16.msk.msra.mxu1 %vm3055_vm4, %v2457_v6  ;;  %v1187_v6 = vrot.slane %v3151_v49, 1  ;;  %v2534_v52 = vpack.c.bf16 %v1605_v45, %v1604_v44  ;;  %v1606_v54 = vrot.slane %v3151_v49, 6  ;;  %v1690_v58 = vrot.slane %v3151_v49, 7  ;;  %v1779_v49 = vld [vmem:[#allocation12 + $0x8] sm:$0xff]  ;;  %v1786_v8 = vld [vmem:[#allocation12 + $0x40] sm:$0xff] }
 0x2a2   :  { %2175 = vmatmul.mubr.msk.f32.vlgmr.msra.gmra.mrb[6].mxu0 %vm294_vm6, %v600_v15  ;;  %2467 = vmatprep.subr.bf16.mxu1 %v2847_v0  ;;  %v1434_v15 = vld [vmem:[#allocation9 + $0x180] sm:$0xff]  ;;  %v1440_v46 = vsel %vm438_vm7, %v1439_v38, %v1438_v37  ;;  %v1691_v59 = vrot.slane %v3144_v60, 6  ;;  %v2551_v4 = vpack.c.bf16 %v1783_v3, %v1782_v2 }
 0x2a3   :  { %2462 = vmatpush3.bf16.msra.mxu0 %v2461_v11  ;;  %2196 = vmatprep.mubr.msk.f32.mxu0 %vm2853_vm5, %v2848_v56  ;;  %v1352_v11 = vld [vmem:[#allocation9 + $0x170] sm:$0xff]  ;;  %v1188_v13 = vsel %vm438_vm7, %v3144_v60, %v1187_v6  ;;  %v2517_v22 = vpack.c.bf16 %v1435_v16, %v1434_v15  ;;  %v1785_v6 = vld [vmem:[#allocation12 + $0x38] sm:$0xff]  ;;  %v1876_v19 = vld [vmem:[#allocation15 + $0x8] sm:$0xff] }
 0x2a4   :  { %2186 = vmatmul.mubr.msk.f32.vlgmr.msra.gmra.mrb[6].mxu1 %vm294_vm6, %v684_v20  ;;  %2463 = vmatprep.subr.bf16.mxu0 %v2847_v0  ;;  %v1518_v20 = vld [vmem:[#allocation9 + $0x1a0] sm:$0xff]  ;;  %v1791_v15 = vld [vmem:[#allocation12 + $0x68] sm:$0xff] }
 0x2a5   :  { %2469 = vmatpush3.bf16.msra.mxu1 %v2468_v17  ;;  %2207 = vmatprep.mubr.msk.f32.mxu1 %vm2853_vm5, %v2848_v56  ;;  %v2513_v17 = vpack.c.bf16 %v1353_v12, %v1352_v11  ;;  %v1788_v11 = vld [vmem:[#allocation12 + $0x50] sm:$0xff]  ;;  %v1789_v12 = vld [vmem:[#allocation12 + $0x58] sm:$0xff]  ;;  %v1880_v26 = vld [vmem:[#allocation15 + $0x28] sm:$0xff] }
 0x2a6   :  { %2470 = vmatprep.subr.bf16.mxu1 %v2847_v0  ;;  %v1875_v18 = vld [vmem:[#allocation15] sm:$0xff] }
 0x2a7   :  { %2466 = vmatpush3.bf16.msk.msra.mxu0 %vm3055_vm4, %v2464_v21  ;;  %v1519_v21 = vld [vmem:[#allocation9 + $0x1a8] sm:$0xff] }
 0x2a8   :  { %2474 = vmatprep.subr.bf16.mxu0 %v2847_v0  ;;  %v2524_v29 = vpack.c.bf16 %v1519_v21, %v1518_v20  ;;  %v1877_v20 = vld [vmem:[#allocation15 + $0x10] sm:$0xff]  ;;  %v2566_v21 = vpack.c.bf16 %v1876_v19, %v1875_v18  ;;  %v1884_v18 = vld [vmem:[#allocation15 + $0x48] sm:$0xff] }
 0x2a9   :  { %2473 = vmatpush3.bf16.msk.msra.mxu1 %vm3055_vm4, %v2471_v25  ;;  %v1355_v25 = vrot.slane %v3144_v60, 2 }
 0x2aa   :  { %2197 = vmatmul.mubr.msk.f32.vlgmr.msra.gmra.mrb[8].mxu0 %vm294_vm6, %v768_v34  ;;  %2481 = vmatprep.subr.bf16.mxu1 %v2847_v0  ;;  %v1602_v34 = vld [vmem:[#allocation9 + $0x1c0] sm:$0xff] }
 0x2ab   :  { %2476 = vmatpush3.bf16.msra.mxu0 %v2475_v30  ;;  %2218 = vmatprep.mubr.msk.f32.mxu0 %vm2853_vm5, %v2848_v56  ;;  %v1520_v30 = vld [vmem:[#allocation9 + $0x1b0] sm:$0xff]  ;;  %v1356_v32 = vsel %vm438_vm7, %v1355_v25, %v1354_v23  ;;  %v2531_v41 = vpack.c.bf16 %v1603_v35, %v1602_v34  ;;  %v1879_v25 = vld [vmem:[#allocation15 + $0x20] sm:$0xff] }
 0x2ac   :  { %2208 = vmatmul.mubr.msk.f32.vlgmr.msra.gmra.mrb[8].mxu1 %vm294_vm6, %v852_v39  ;;  %2477 = vmatprep.subr.bf16.mxu0 %v2847_v0  ;;  %v1686_v39 = vld [vmem:[#allocation9 + $0x1e0] sm:$0xff]  ;;  %v2572_v27 = vpack.c.bf16 %v1880_v26, %v1879_v25 }
 0x2ad   :  { %2483 = vmatpush3.bf16.msra.mxu1 %v2482_v36  ;;  %2229 = vmatprep.mubr.msk.f32.mxu1 %vm2853_vm5, %v2848_v56  ;;  %v2527_v36 = vpack.c.bf16 %v1521_v31, %v1520_v30 }
 0x2ae   :  { %2484 = vmatprep.subr.bf16.mxu1 %v2847_v0 }
 0x2af   :  { %2480 = vmatpush3.bf16.msk.msra.mxu0 %vm3055_vm4, %v2478_v40  ;;  %v1687_v40 = vld [vmem:[#allocation9 + $0x1e8] sm:$0xff] }
 0x2b0   :  { %2488 = vmatprep.subr.bf16.mxu0 %v2847_v0  ;;  %v2538_v47 = vpack.c.bf16 %v1687_v40, %v1686_v39 }
 0x2b1   :  { %2487 = vmatpush3.bf16.msk.msra.mxu1 %vm3055_vm4, %v2485_v43  ;;  %v1523_v43 = vrot.slane %v3144_v60, 4 }
 0x2b2   :  { %2219 = vmatmul.mubr.msk.f32.vlgmr.msra.gmra.mrb[10].mxu0 %vm294_vm6, %v936_v53  ;;  %2495 = vmatprep.subr.bf16.mxu1 %v2847_v0 }
 0x2b3   :  { %2490 = vmatpush3.bf16.msra.mxu0 %v2489_v48  ;;  %2240 = vmatprep.mubr.msk.f32.mxu0 %vm2853_vm5, %v2848_v56  ;;  %v1688_v48 = vld [vmem:[#allocation9 + $0x1f0] sm:$0xff]  ;;  %v1524_v51 = vsel %vm438_vm7, %v1523_v43, %v1522_v42 }
 0x2b4   :  { %2230 = vmatmul.mubr.msk.f32.vlgmr.msra.gmra.mrb[10].mxu1 %vm294_vm6, %v1020_v57  ;;  %2491 = vmatprep.subr.bf16.mxu0 %v2847_v0  ;;  %v2541_v53 = vpack.c.bf16 %v1689_v50, %v1688_v48 }
 0x2b5   :  { %2497 = vmatpush3.bf16.msra.mxu1 %v2496_v55  ;;  %2251 = vmatprep.mubr.msk.f32.mxu1 %vm2853_vm5, %v2848_v56  ;;  %v1607_v55 = vrot.slane %v3144_v60, 5  ;;  %v1778_v60 = vld [vmem:[#allocation12] sm:$0xff] }
 0x2b6   :  { %2498 = vmatprep.subr.bf16.mxu1 %v2847_v0  ;;  %v2545_v24 = vpack.c.bf16 %v1779_v49, %v1778_v60 }
 0x2b7   :  { %2494 = vmatpush3.bf16.msk.msra.mxu0 %vm3055_vm4, %v2492_v61  ;;  %v1608_v57 = vsel %vm438_vm7, %v1607_v55, %v1606_v54  ;;  %v1692_v61 = vsel %vm438_vm7, %v1691_v59, %v1690_v58 }
 0x2b8   :  { %2502 = vmatprep.subr.bf16.mxu0 %v2847_v0 }
 0x2b9   :  { %2501 = vmatpush3.bf16.msk.msra.mxu1 %vm3055_vm4, %v2499_v1  ;;  %v2548_v1 = vpack.c.bf16 %v1781_v63, %v1780_v62 }
 0x2ba   :  { %2241 = vmatmul.mubr.msk.f32.vlgmr.msra.gmra.mrb[12].mxu0 %vm294_vm6, %v1105_v9  ;;  %2509 = vmatprep.subr.bf16.mxu1 %v2847_v0  ;;  %v1787_v9 = vld [vmem:[#allocation12 + $0x48] sm:$0xff] }
 0x2bb   :  { %2504 = vmatpush3.bf16.msra.mxu0 %v2503_v5  ;;  %2262 = vmatprep.mubr.msk.f32.mxu0 %vm2853_vm5, %v2848_v56  ;;  %v1784_v5 = vld [vmem:[#allocation12 + $0x30] sm:$0xff] }
 0x2bc   :  { %2252 = vmatmul.mubr.msk.f32.vlgmr.msra.gmra.mrb[12].mxu1 %vm294_vm6, %v1188_v13  ;;  %2505 = vmatprep.subr.bf16.mxu0 %v2847_v0  ;;  %v2554_v7 = vpack.c.bf16 %v1785_v6, %v1784_v5  ;;  %v2560_v13 = vpack.c.bf16 %v1789_v12, %v1788_v11  ;;  %v2030_v12 = vld [vmem:[#allocation11] ss:$0 sm:$0xff] }
 0x2bd   :  { %2511 = vmatpush3.bf16.msra.mxu1 %v2510_v10  ;;  %2273 = vmatprep.mubr.msk.f32.mxu1 %vm2853_vm5, %v2848_v56  ;;  %v2557_v10 = vpack.c.bf16 %v1787_v9, %v1786_v8 }
 0x2be   :  { %2512 = vmatprep.subr.bf16.mxu1 %v2847_v0 }
 0x2bf   :  { %2508 = vmatpush3.bf16.msk.msra.mxu0 %vm3055_vm4, %v2506_v14  ;;  %v1790_v14 = vld [vmem:[#allocation12 + $0x60] sm:$0xff] }
 0x2c0   :  { %2516 = vmatprep.subr.bf16.mxu0 %v2847_v0  ;;  %v2563_v16 = vpack.c.bf16 %v1791_v15, %v1790_v14 }
 0x2c1   :  { %2515 = vmatpush3.bf16.msk.msra.mxu1 %vm3055_vm4, %v2513_v17  ;;  %v1792_v17 = vld [vmem:[#allocation12 + $0x70] sm:$0xff] }
 0x2c2   :  { %2263 = vmatmul.mubr.msk.f32.vlgmr.msra.gmra.mrb[14].mxu0 %vm294_vm6, %v1272_v28  ;;  %2523 = vmatprep.subr.bf16.mxu1 %v2847_v0  ;;  %v1881_v28 = vld [vmem:[#allocation15 + $0x30] sm:$0xff] }
 0x2c3   :  { %2518 = vmatpush3.bf16.msra.mxu0 %v2517_v22  ;;  %2284 = vmatprep.mubr.msk.f32.mxu0 %vm2853_vm5, %v2848_v56  ;;  %v1878_v22 = vld [vmem:[#allocation15 + $0x18] sm:$0xff] }
 0x2c4   :  { %2274 = vmatmul.mubr.msk.f32.vlgmr.msra.gmra.mrb[14].mxu1 %vm294_vm6, %v1356_v32  ;;  %2519 = vmatprep.subr.bf16.mxu0 %v2847_v0  ;;  %v2569_v23 = vpack.c.bf16 %v1878_v22, %v1877_v20  ;;  %v1885_v20 = vld [vmem:[#allocation15 + $0x50] sm:$0xf] }
 0x2c5   :  { %2525 = vmatpush3.bf16.msra.mxu1 %v2524_v29  ;;  %2295 = vmatprep.mubr.msk.f32.mxu1 %vm2853_vm5, %v2848_v56  ;;  %v1882_v29 = vld [vmem:[#allocation15 + $0x38] sm:$0xff] }
 0x2c6   :  { %2526 = vmatprep.subr.bf16.mxu1 %v2847_v0  ;;  %v2575_v30 = vpack.c.bf16 %v1882_v29, %v1881_v28 }
 0x2c7   :  { %2522 = vmatpush3.bf16.msk.msra.mxu0 %vm3055_vm4, %v2520_v33 }
 0x2c8   :  { %2530 = vmatprep.subr.bf16.mxu0 %v2847_v0 }
 0x2c9   :  { %2529 = vmatpush3.bf16.msk.msra.mxu1 %vm3055_vm4, %v2527_v36 }
 0x2ca   :  { %2285 = vmatmul.mubr.msk.f32.vlgmr.msra.gmra.mrb[16].mxu0 %vm294_vm6, %v1440_v46  ;;  %2537 = vmatprep.subr.bf16.mxu1 %v2847_v0 }
 0x2cb   :  { %2532 = vmatpush3.bf16.msra.mxu0 %v2531_v41  ;;  %2306 = vmatprep.mubr.msk.f32.mxu0 %vm2853_vm5, %v2848_v56 }
 0x2cc   :  { %2296 = vmatmul.mubr.msk.f32.vlgmr.msra.gmra.mrb[16].mxu1 %vm294_vm6, %v1524_v51  ;;  %2533 = vmatprep.subr.bf16.mxu0 %v2847_v0 }
 0x2cd   :  { %2539 = vmatpush3.bf16.msra.mxu1 %v2538_v47  ;;  %2317 = vmatprep.mubr.msk.f32.mxu1 %vm2853_vm5, %v2848_v56 }
 0x2ce   :  { %2540 = vmatprep.subr.bf16.mxu1 %v2847_v0 }
 0x2cf   :  { %2536 = vmatpush3.bf16.msk.msra.mxu0 %vm3055_vm4, %v2534_v52 }
 0x2d0   :  { %2544 = vmatprep.subr.bf16.mxu0 %v2847_v0 }
 0x2d1   :  { %2543 = vmatpush3.bf16.msk.msra.mxu1 %vm3055_vm4, %v2541_v53 }
 0x2d2   :  { %2307 = vmatmul.mubr.msk.f32.vlgmr.msra.gmra.mrb[18].mxu0 %vm294_vm6, %v1608_v57  ;;  %2565 = vmatprep.subr.bf16.mxu1 %v2847_v0 }
 0x2d3   :  { %2350 = vmatprep.mubr.msk.f32.mxu0 %vm2853_vm5, %v2848_v56  ;;  %2546 = vmatpush3.bf16.msra.mxu0 %v2545_v24 }
 0x2d4   :  { %2318 = vmatmul.mubr.msk.f32.vlgmr.msra.gmra.mrb[18].mxu1 %vm294_vm6, %v1692_v61  ;;  %2547 = vmatprep.subr.bf16.mxu0 %v2847_v0 }
 0x2d5   :  { %2375 = vmatprep.mubr.msk.f32.mxu1 %vm2853_vm5, %v2848_v56  ;;  %2567 = vmatpush3.bf16.msra.mxu1 %v2566_v21  ;;  %v2031_v21 = vld [vmem:[#allocation14] ss:$0 sm:$0xff] }
 0x2d6   :  { %2568 = vmatprep.subr.bf16.mxu1 %v2847_v0 }
 0x2d7   :  { %2549 = vmatpush3.bf16.msra.mxu0 %v2548_v1 }
 0x2d8   :  { %2550 = vmatprep.subr.bf16.mxu0 %v2847_v0 }
 0x2d9   :  { %2570 = vmatpush3.bf16.msra.mxu1 %v2569_v23 }
 0x2da   :  { %2571 = vmatprep.subr.bf16.mxu1 %v2847_v0 }
 0x2db   :  { %2552 = vmatpush3.bf16.msra.mxu0 %v2551_v4 }
 0x2dc   :  { %2553 = vmatprep.subr.bf16.mxu0 %v2847_v0 }
 0x2dd   :  { %2573 = vmatpush3.bf16.msra.mxu1 %v2572_v27  ;;  %v2033_v27 = vld [vmem:[#allocation17] ss:$0 sm:$0xff] }
 0x2de   :  { %2574 = vmatprep.subr.bf16.mxu1 %v2847_v0 }
 0x2df   :  { %2555 = vmatpush3.bf16.msra.mxu0 %v2554_v7 }
 0x2e0   :  { %2556 = vmatprep.subr.bf16.mxu0 %v2847_v0 }
 0x2e1   :  { %2576 = vmatpush3.bf16.msra.mxu1 %v2575_v30 }
 0x2e2   :  { %2577 = vmatprep.subr.bf16.mxu1 %v2847_v0 }
 0x2e3   :  { %2558 = vmatpush3.bf16.msra.mxu0 %v2557_v10 }
 0x2e4   :  { %2559 = vmatprep.subr.bf16.mxu0 %v2847_v0 }
 0x2e7   :  { %2561 = vmatpush3.bf16.msra.mxu0 %v2560_v13 }
 0x2e8   :  { %2562 = vmatprep.subr.bf16.mxu0 %v2847_v0 }
 0x2eb   :  { %2564 = vmatpush3.bf16.msra.mxu0 %v2563_v16 }
 0x2ec   :  { %2348 = vmatprep.subr.mxu0 %v2848_v56 }
 0x2ef   :  { %2349 = vmatpush3.msra.mxu0 %v1792_v17  ;;  %v1883_v17 = vld [vmem:[#allocation15 + $0x40] sm:$0xff] }
 0x2f0   :  { %v2578_v19 = vpack.c.bf16 %v1884_v18, %v1883_v17 }
 0x2f2   :  { %2579 = vmatpush3.bf16.msra.mxu1 %v2578_v19 }
 0x2f3   :  { %2373 = vmatprep.subr.mxu1 %v2848_v56 }
 0x2f6   :  { %2374 = vmatpush3.msk.msra.mxu1 %vm1897_vm9, %v1885_v20 }
 0x36d   :  { %v512_v31 = vpop.f32.mrb[4].mxu0 }
 0x36e   :  { %v2154_v32 = vpop.f32.mrb[5].mxu0 }
 0x36f   :  { %v589_v33 = vpop.f32.mrb[4].mxu1 }
 0x370   :  { %v590_v34 = vadd.f32 %v589_v33, %v512_v31  ;;  %v2165_v35 = vpop.f32.mrb[5].mxu1 }
 0x375   :  { %v672_v36 = vpop.f32.mrb[6].mxu0 }
 0x376   :  { %v676_v37 = vadd.f32 %v672_v36, %v590_v34  ;;  %v2176_v38 = vpop.f32.mrb[7].mxu0 }
 0x377   :  { %v756_v39 = vpop.f32.mrb[6].mxu1 }
 0x378   :  { %v760_v40 = vadd.f32 %v756_v39, %v676_v37  ;;  %v2187_v41 = vpop.f32.mrb[7].mxu1 }
 0x37d   :  { %v840_v42 = vpop.f32.mrb[8].mxu0 }
 0x37e   :  { %v844_v43 = vadd.f32 %v840_v42, %v760_v40  ;;  %v2198_v44 = vpop.f32.mrb[9].mxu0 }
 0x37f   :  { %v924_v45 = vpop.f32.mrb[8].mxu1 }
 0x380   :  { %v928_v46 = vadd.f32 %v924_v45, %v844_v43  ;;  %v2209_v47 = vpop.f32.mrb[9].mxu1 }
 0x385   :  { %v1008_v48 = vpop.f32.mrb[10].mxu0 }
 0x386   :  { %v1012_v50 = vadd.f32 %v1008_v48, %v928_v46  ;;  %v2220_v0 = vpop.f32.mrb[11].mxu0 }
 0x387   :  { %v1092_v51 = vpop.f32.mrb[10].mxu1 }
 0x388   :  { %v1096_v52 = vadd.f32 %v1092_v51, %v1012_v50  ;;  %v2231_v53 = vpop.f32.mrb[11].mxu1 }
 0x38d   :  { %v1177_v54 = vpop.f32.mrb[12].mxu0 }
 0x38e   :  { %v1181_v55 = vadd.f32 %v1177_v54, %v1096_v52  ;;  %v2242_v58 = vpop.f32.mrb[13].mxu0 }
 0x38f   :  { %v1260_v59 = vpop.f32.mrb[12].mxu1 }
 0x390   :  { %v1264_v57 = vadd.f32 %v1260_v59, %v1181_v55  ;;  %v2253_v61 = vpop.f32.mrb[13].mxu1 }
 0x395   :  { %v1344_v60 = vpop.f32.mrb[14].mxu0 }
 0x396   :  { %v1348_v49 = vadd.f32 %v1344_v60, %v1264_v57  ;;  %v2264_v24 = vpop.f32.mrb[15].mxu0 }
 0x397   :  { %v1428_v62 = vpop.f32.mrb[14].mxu1 }
 0x398   :  { %v1432_v63 = vadd.f32 %v1428_v62, %v1348_v49  ;;  %v2275_v1 = vpop.f32.mrb[15].mxu1 }
 0x39d   :  { %v1512_v2 = vpop.f32.mrb[16].mxu0 }
 0x39e   :  { %v1516_v3 = vadd.f32 %v1512_v2, %v1432_v63  ;;  %v2286_v4 = vpop.f32.mrb[17].mxu0 }
 0x39f   :  { %v1596_v5 = vpop.f32.mrb[16].mxu1 }
 0x3a0   :  { %v1600_v6 = vadd.f32 %v1596_v5, %v1516_v3  ;;  %v2297_v7 = vpop.f32.mrb[17].mxu1 }
 0x3a5   :  { %v1680_v8 = vpop.f32.mrb[18].mxu0 }
 0x3a6   :  { %v1684_v9 = vadd.f32 %v1680_v8, %v1600_v6  ;;  %v2308_v10 = vpop.f32.mrb[19].mxu0 }
 0x3a7   :  { %v1764_v11 = vpop.f32.mrb[18].mxu1 }
 0x3a8   :  { %v1768_v13 = vadd.f32 %v1764_v11, %v1684_v9  ;;  %v2319_v14 = vpop.f32.mrb[19].mxu1 }
 0x3aa   :  { %v1776_v15 = vadd.f32 %v2030_v12, %v1768_v13 }
 0x3ac   :  { %v1777_v16 = vmax.f32 %v1776_v15, 0.0 }
 0x3ae   :  { %2351 = vmatmul.mubr.msk.f32.vlgmr.msra.gmra.mrb[20].mxu0 %vm1800_vm8, %v1777_v16 }
 0x481   :  { %v1870_v22 = vpop.f32.mrb[20].mxu0 }
 0x482   :  { %v1871_v23 = vadd.f32 %v2031_v21, %v1870_v22  ;;  %v2352_v25 = vpop.f32.mrb[21].mxu0 }
 0x484   :  { %v1874_v26 = vmax.f32 %v1871_v23, 0.0 }
 0x486   :  { %2376 = vmatmul.mubr.msk.f32.vlgmr.msra.gmra.mrb[20].mxu1 %vm1893_vm10, %v1874_v26 }
 0x559   :  { %v1967_v28 = vpop.f32.mrb[20].mxu1 }
 0x55a   :  { %v1968_v29 = vadd.f32 %v2033_v27, %v1967_v28  ;;  %v2377_v30 = vpop.f32.mrb[21].mxu1 }
 0x55c   :  { %1972 = vst.msk [vmem:[#allocation18] sm:$0x3] %vm1971_vm11, %v1968_v29 }
 0x55d   :  { %2811 = shalt.err (!%p2808_p6)
}
 0x55e   :  { %s2812_s29 = scalar_lea.hbm %s3267_s9, 32 }
 0x55f   :  { %p2813_p7 = scmp.ne.s32.totalorder %s3267_s9, %s2812_s29  ;;  %p2816_p8 = scmp.lt.u32.totalorder %s2812_s29, %s3267_s9 }
 0x561   :  { %p2818_p9 = pnand %p2816_p8, %p2813_p7 }
 0x563   :  { %2821 = shalt.err (!%p2818_p9)
}
 0x564   :  { %1982 = dma.vmem_to_hbm [thread:$0]  %s1980_s10, 32, %s3267_s9, [#allocation5]  }
 0x565   :  { %2832 = dma.done.wait [#allocation5], 32  }
 0x566   :  { %2833 = vsyncadd [#allocation5], 4294967264 }
 0x567   :  { %1986 = vsyncpa [#allocation4], 1 }
 0x568   :  { %1987 = vsyncpa [#allocation7], 1 }
 0x569   :  { %1988 = vsyncpa [#allocation10], 1 }
 0x56a   :  { %1989 = vsyncpa [#allocation13], 1 }
 0x56b   :  { %1990 = vsyncpa [#allocation16], 1 }
 0x56c   :  { %1991 = vsyncpa [#allocation5], 1 }

</bundles_post_ra>
